<compile_context>
chip_gen: v7x
topology: tpu7x:2x2x1
jax: 0.10.0
libtpu: 0.0.40
codegen_flags: <defaults>
</compile_context>

<pallas_src>
import math
from functools import partial

import jax
import jax.numpy as jnp
from jax.experimental import pallas as pl
from jax.experimental.pallas import tpu as pltpu


def _attention_kernel(q_ref, kt_ref, v_ref, o_ref, *, inv_scale):
    # q_ref: (G, Sq, D), kt_ref: (G, D, Sk), v_ref: (G, Sk, Dv), o_ref: (G, Sq, Dv)
    # Fold the 1/sqrt(D) scale into q (no more elements than the score slab).
    q = q_ref[...] * inv_scale

    # qk = q @ k^T with K already pre-transposed to (D, Sk) per head:
    # contraction is on the RHS sublane dim, Sk lands on lanes (MXU-native
    # layout, no in-kernel XLU transpose). f32 accumulation on the MXU.
    s = jnp.einsum(
        "gqd,gdk->gqk", q, kt_ref[...], preferred_element_type=jnp.float32
    )

    # Numerically-stable softmax along the last axis, kept in f32.
    m = jnp.max(s, axis=-1, keepdims=True)
    p = jnp.exp(s - m)
    denom = jnp.sum(p, axis=-1, keepdims=True)
    p = p * pl.reciprocal(denom, approx=True)  # EUP rcp, off the VALU path

    # Dropout(0.05) in eval mode == identity.

    out = jnp.einsum(
        "gqk,gkv->gqv",
        p.astype(v_ref.dtype),
        v_ref[...],
        preferred_element_type=jnp.float32,
    )
    o_ref[...] = out.astype(o_ref.dtype)


def _num_tensorcores_per_chip():
    """1 TC/chip on v5e/v6e, 2 TC/chip on v7x. Defensive: default to 1."""
    try:
        kind = jax.devices()[0].device_kind.lower()
    except Exception:
        return 1
    if "v7" in kind or "7x" in kind:
        return 2
    return 1


def _choose_grid(bh, num_tensorcores):
    """Heads-per-step G and step count.

    Single grid step on 1-TC chips (no per-step pipeline overhead, one big
    contiguous DMA per tensor). On 2-TC chips split the head axis into 2
    'parallel' steps iff it divides evenly -- never pad."""
    if num_tensorcores >= 2 and bh >= 2 and bh % 2 == 0:
        return bh // 2, 2
    return bh, 1


def attention(q, k, v, *, matmul_dtype=None, num_tensorcores=None):
    B, H, Sq, D = q.shape
    _, _, Sk, Dk = k.shape
    Dv = v.shape[-1]
    assert Dk == D and k.shape[:2] == (B, H) and v.shape[:3] == (B, H, Sk)

    BH = B * H
    if num_tensorcores is None:
        num_tensorcores = _num_tensorcores_per_chip()
    G, n_steps = _choose_grid(BH, num_tensorcores)

    qf = q.reshape(BH, Sq, D)
    # Pre-transpose K ONCE in the wrapper -> (BH, D, Sk): MXU-native RHS
    # layout (contraction on sublanes, Sk on lanes).
    ktf = jnp.swapaxes(k.reshape(BH, Sk, D), -1, -2)
    vf = v.reshape(BH, Sk, Dv)

    if matmul_dtype is not None:
        # Cast in the wrapper (halves HBM->VMEM DMA bytes), not in the kernel.
        qf = qf.astype(matmul_dtype)
        ktf = ktf.astype(matmul_dtype)
        vf = vf.astype(matmul_dtype)

    inv_scale = 1.0 / math.sqrt(float(D))  # k_dim = k.shape[-1]
    kernel = partial(_attention_kernel, inv_scale=inv_scale)

    out_flat = pl.pallas_call(
        kernel,
        out_shape=jax.ShapeDtypeStruct((BH, Sq, Dv), q.dtype),
        grid_spec=pltpu.PrefetchScalarGridSpec(
            num_scalar_prefetch=0,
            grid=(n_steps,),
            in_specs=[
                pl.BlockSpec((G, Sq, D), lambda i: (i, 0, 0)),
                pl.BlockSpec((G, D, Sk), lambda i: (i, 0, 0)),
                pl.BlockSpec((G, Sk, Dv), lambda i: (i, 0, 0)),
            ],
            out_specs=pl.BlockSpec((G, Sq, Dv), lambda i: (i, 0, 0)),
        ),
        compiler_params=pltpu.CompilerParams(
            dimension_semantics=("parallel",) if n_steps > 1 else ("arbitrary",),
        ),
    )(qf, ktf, vf)

    return out_flat.reshape(B, H, Sq, Dv)


def reference(q, k, v):
    d = k.shape[-1]
    s = jnp.einsum("bhqd,bhkd->bhqk", q, k) / math.sqrt(float(d))
    p = jax.nn.softmax(s, axis=-1)
    return jnp.einsum("bhqk,bhkv->bhqv", p, v)


if __name__ == "__main__":
    # Small shapes consistent with the module's batched attention pattern.
    B, H, Sq, Sk, D, Dv = 4, 8, 8, 16, 16, 32
    key = jax.random.PRNGKey(0)
    kq, kk, kv = jax.random.split(key, 3)
    q = jax.random.normal(kq, (B, H, Sq, D), dtype=jnp.float32)
    k = jax.random.normal(kk, (B, H, Sk, D), dtype=jnp.float32)
    v = jax.random.normal(kv, (B, H, Sk, Dv), dtype=jnp.float32)

    ref = reference(q, k, v)

    # Default path: f32 MXU operands (matches the f32 PyTorch module).
    out = jax.block_until_ready(attention(q, k, v))
    assert out.shape == (B, H, Sq, Dv)
    assert jnp.allclose(out, ref, atol=1e-2, rtol=1e-2)

    # Optional bf16 MXU fast path (wrapper-side cast); softmax/accum stay f32.
    out_bf16 = jax.block_until_ready(attention(q, k, v, matmul_dtype=jnp.bfloat16))
    assert out_bf16.shape == (B, H, Sq, Dv)
    assert jnp.allclose(out_bf16, ref, atol=1e-1, rtol=1e-1)

    print("KERNEL_OK")
</pallas_src>

<mosaic_0001>
module attributes {stable_mosaic.version = 11 : i64} {
  func.func @_attention_kernel(%arg0: i32, %arg1: memref<32x8x16xf32, #tpu.memory_space<vmem>>, %arg2: memref<32x16x16xf32, #tpu.memory_space<vmem>>, %arg3: memref<32x16x32xf32, #tpu.memory_space<vmem>>, %arg4: memref<32x8x32xf32, #tpu.memory_space<vmem>>) attributes {dimension_semantics = [#tpu.dimension_semantics<arbitrary>], iteration_bounds = array<i64: 1>, scalar_prefetch = 0 : i64, scratch_operands = 0 : i64, tpu.core_type = #tpu.core_type<tc>, window_params = [{transform_indices = @transform_0, window_bounds = array<i64: 32, 8, 16>}, {transform_indices = @transform_1, window_bounds = array<i64: 32, 16, 16>}, {transform_indices = @transform_2, window_bounds = array<i64: 32, 16, 32>}, {transform_indices = @transform_3, window_bounds = array<i64: 32, 8, 32>}]} {
    %c0 = arith.constant 0 : index
    %c0_0 = arith.constant 0 : index
    %c0_1 = arith.constant 0 : index
    %0 = vector.load %arg1[%c0, %c0_0, %c0_1] : memref<32x8x16xf32, #tpu.memory_space<vmem>>, vector<32x8x16xf32>
    %cst = arith.constant 2.500000e-01 : f32
    %1 = vector.broadcast %cst : f32 to vector<32x8x16xf32>
    %2 = arith.mulf %0, %1 : vector<32x8x16xf32>
    %c0_2 = arith.constant 0 : index
    %c0_3 = arith.constant 0 : index
    %c0_4 = arith.constant 0 : index
    %3 = vector.load %arg2[%c0_2, %c0_3, %c0_4] : memref<32x16x16xf32, #tpu.memory_space<vmem>>, vector<32x16x16xf32>
    "tpu.trace_start"() <{level = 10 : i32, message = "gqd,gdk->gqk"}> : () -> ()
    %cst_5 = arith.constant dense<0.000000e+00> : vector<32x8x16xf32>
    %4 = tpu.matmul %2, %3, %cst_5 {dimension_numbers = #tpu.dot_dimension_numbers<[2], [1], [1], [2], [0, 0, 0, 1, 1, 2], [0], [0]>} : vector<32x8x16xf32>, vector<32x16x16xf32>, vector<32x8x16xf32> -> vector<32x8x16xf32>
    "tpu.trace_stop"() : () -> ()
    %cst_6 = arith.constant dense<0xFF800000> : vector<32x8xf32>
    %5 = vector.multi_reduction <maximumf>, %4, %cst_6 [2] : vector<32x8x16xf32> to vector<32x8xf32>
    %6 = vector.shape_cast %5 : vector<32x8xf32> to vector<32x8x1xf32>
    %7 = vector.broadcast %6 : vector<32x8x1xf32> to vector<32x8x16xf32>
    %8 = arith.subf %4, %7 : vector<32x8x16xf32>
    %9 = math.exp %8 : vector<32x8x16xf32>
    %cst_7 = arith.constant dense<0.000000e+00> : vector<32x8xf32>
    %10 = vector.multi_reduction <add>, %9, %cst_7 [2] : vector<32x8x16xf32> to vector<32x8xf32>
    %11 = vector.shape_cast %10 : vector<32x8xf32> to vector<32x8x1xf32>
    %12 = tpu.reciprocal %11 {approx = true} : vector<32x8x1xf32> -> vector<32x8x1xf32>
    %13 = vector.broadcast %12 : vector<32x8x1xf32> to vector<32x8x16xf32>
    %14 = arith.mulf %9, %13 : vector<32x8x16xf32>
    %c0_8 = arith.constant 0 : index
    %c0_9 = arith.constant 0 : index
    %c0_10 = arith.constant 0 : index
    %15 = vector.load %arg3[%c0_8, %c0_9, %c0_10] : memref<32x16x32xf32, #tpu.memory_space<vmem>>, vector<32x16x32xf32>
    "tpu.trace_start"() <{level = 10 : i32, message = "gqk,gkv->gqv"}> : () -> ()
    %cst_11 = arith.constant dense<0.000000e+00> : vector<32x8x32xf32>
    %16 = tpu.matmul %14, %15, %cst_11 {dimension_numbers = #tpu.dot_dimension_numbers<[2], [1], [1], [2], [0, 0, 0, 1, 1, 2], [0], [0]>} : vector<32x8x16xf32>, vector<32x16x32xf32>, vector<32x8x32xf32> -> vector<32x8x32xf32>
    "tpu.trace_stop"() : () -> ()
    %c0_12 = arith.constant 0 : index
    %c0_13 = arith.constant 0 : index
    %c0_14 = arith.constant 0 : index
    %17 = vector.load %arg4[%c0_12, %c0_13, %c0_14] : memref<32x8x32xf32, #tpu.memory_space<vmem>>, vector<32x8x32xf32>
    tpu.vector_store %arg4[%c0_12, %c0_13, %c0_14], %16 {strides = array<i32>} : memref<32x8x32xf32, #tpu.memory_space<vmem>>, vector<32x8x32xf32>,
    return
  }
  func.func @transform_0(%arg0: i32) -> (i32, i32, i32) {
    %c0_i32 = arith.constant 0 : i32
    %c0_i32_0 = arith.constant 0 : i32
    %c0_i32_1 = arith.constant 0 : i32
    return %arg0, %c0_i32, %c0_i32_0 : i32, i32, i32
  }
  func.func @transform_1(%arg0: i32) -> (i32, i32, i32) {
    %c0_i32 = arith.constant 0 : i32
    %c0_i32_0 = arith.constant 0 : i32
    %c0_i32_1 = arith.constant 0 : i32
    return %arg0, %c0_i32, %c0_i32_0 : i32, i32, i32
  }
  func.func @transform_2(%arg0: i32) -> (i32, i32, i32) {
    %c0_i32 = arith.constant 0 : i32
    %c0_i32_0 = arith.constant 0 : i32
    %c0_i32_1 = arith.constant 0 : i32
    return %arg0, %c0_i32, %c0_i32_0 : i32, i32, i32
  }
  func.func @transform_3(%arg0: i32) -> (i32, i32, i32) {
    %c0_i32 = arith.constant 0 : i32
    %c0_i32_0 = arith.constant 0 : i32
    %c0_i32_1 = arith.constant 0 : i32
    return %arg0, %c0_i32, %c0_i32_0 : i32, i32, i32
  }
}

</mosaic_0001>

<bundles_post_ra>
// kernel: tpu_custom_call.1
= control target key start
LH: loop header
LB: loop body
LE: loop exit
PB: predicated region body
PF: predicated region fallthrough
CT: control target
= control target key end

     0   :  { %v6335_v3 = vmov 0.0|0.0   ;;  %vm6336_vm0 = vmmov 0   ;;  %v6337_v5 = vmov 0.0   ;;  %vm143_vm1 = vcmask 130048   ;;  %s7461_s0 = inlined_call_operand.vmem [shape: f32[32,8,16], index: 0, kind: input, shape index: {}]   ;;  %s7462_s1 = inlined_call_operand.vmem [shape: f32[32,16,16], index: 1, kind: input, shape index: {}]   ;;  %s7463_s2 = inlined_call_operand.vmem [shape: f32[32,16,32], index: 2, kind: input, shape index: {}]   ;;  %s7464_s3 = inlined_call_operand.hbm [shape: f32[32,8,32], index: 3, kind: output, shape index: {}]  }
   0x1   :  { %v79_v0 = vld [vmem:[%s7462_s1] sm:$0xff]  ;;  %v80_v1 = vld [vmem:[%s7462_s1 + $0x8] sm:$0xff]  ;;  %5985 = vmatprep.subr.bf16.mxu0 %v6335_v3  ;;  %5541 = vmatprep.mubr.msk.f32.mxu0 %vm6336_vm0, %v6337_v5  ;;  %v81_v6 = vld [vmem:[%s7462_s1 + $0x10] sm:$0xff] }
   0x2   :  { %v15_v2 = vld [vmem:[%s7461_s0] sm:$0xff]  ;;  %v5986_v4 = vpack.c.bf16 %v80_v1, %v79_v0  ;;  %v82_v7 = vld [vmem:[%s7462_s1 + $0x18] sm:$0xff]  ;;  %5988 = vmatprep.subr.bf16.mxu1 %v6335_v3  ;;  %v84_v11 = vld [vmem:[%s7462_s1 + $0x28] sm:$0xff]  ;;  %5548 = vmatprep.mubr.msk.f32.mxu1 %vm6336_vm0, %v6337_v5 }
   0x3   :  { %v83_v8 = vld [vmem:[%s7462_s1 + $0x20] sm:$0xff]  ;;  %v47_v9 = vmul.f32 0.25, %v15_v2  ;;  %v5989_v10 = vpack.c.bf16 %v82_v7, %v81_v6  ;;  %v16_v12 = vld [vmem:[%s7461_s0 + $0x8] sm:$0xff]  ;;  %v17_v14 = vld [vmem:[%s7461_s0 + $0x10] sm:$0xff] }
   0x4   :  { %5987 = vmatpush3.bf16.msra.mxu0 %v5986_v4  ;;  %v5992_v13 = vpack.c.bf16 %v84_v11, %v83_v8  ;;  %v85_v15 = vld [vmem:[%s7462_s1 + $0x30] sm:$0xff]  ;;  %v86_v16 = vld [vmem:[%s7462_s1 + $0x38] sm:$0xff]  ;;  %v48_v17 = vmul.f32 0.25, %v16_v12  ;;  %v87_v18 = vld [vmem:[%s7462_s1 + $0x40] sm:$0xff]  ;;  %v49_v22 = vmul.f32 0.25, %v17_v14 }
   0x5   :  { %5991 = vmatprep.subr.bf16.mxu0 %v6335_v3  ;;  %5990 = vmatpush3.bf16.msra.mxu1 %v5989_v10  ;;  %v88_v19 = vld [vmem:[%s7462_s1 + $0x48] sm:$0xff]  ;;  %v5995_v20 = vpack.c.bf16 %v86_v16, %v85_v15  ;;  %v18_v21 = vld [vmem:[%s7461_s0 + $0x18] sm:$0xff]  ;;  %v89_v23 = vld [vmem:[%s7462_s1 + $0x50] sm:$0xff] }
   0x6   :  { %5994 = vmatprep.subr.bf16.mxu1 %v6335_v3  ;;  %v90_v24 = vld [vmem:[%s7462_s1 + $0x58] sm:$0xff]  ;;  %v5998_v25 = vpack.c.bf16 %v88_v19, %v87_v18  ;;  %v19_v26 = vld [vmem:[%s7461_s0 + $0x20] sm:$0xff]  ;;  %v50_v27 = vmul.f32 0.25, %v18_v21  ;;  %v92_v29 = vld [vmem:[%s7462_s1 + $0x68] sm:$0xff] }
   0x7   :  { %5542 = vmatmul.mubr.msk.f32.vlgmr.msra.gmra.mrb[0].mxu0 %vm143_vm1, %v47_v9  ;;  %v91_v28 = vld [vmem:[%s7462_s1 + $0x60] sm:$0xff]  ;;  %v6001_v30 = vpack.c.bf16 %v90_v24, %v89_v23  ;;  %v20_v31 = vld [vmem:[%s7461_s0 + $0x28] sm:$0xff]  ;;  %v51_v32 = vmul.f32 0.25, %v19_v26  ;;  %v93_v33 = vld [vmem:[%s7462_s1 + $0x70] sm:$0xff] }
   0x8   :  { %5993 = vmatpush3.bf16.msra.mxu0 %v5992_v13  ;;  %5555 = vmatprep.mubr.msk.f32.mxu0 %vm6336_vm0, %v6337_v5  ;;  %v94_v34 = vld [vmem:[%s7462_s1 + $0x78] sm:$0xff]  ;;  %v6004_v35 = vpack.c.bf16 %v92_v29, %v91_v28  ;;  %v21_v36 = vld [vmem:[%s7461_s0 + $0x30] sm:$0xff]  ;;  %v52_v37 = vmul.f32 0.25, %v20_v31  ;;  %v95_v38 = vld [vmem:[%s7462_s1 + $0x80] sm:$0xff] }
   0x9   :  { %5549 = vmatmul.mubr.msk.f32.vlgmr.msra.gmra.mrb[0].mxu1 %vm143_vm1, %v48_v17  ;;  %5997 = vmatprep.subr.bf16.mxu0 %v6335_v3  ;;  %v96_v39 = vld [vmem:[%s7462_s1 + $0x88] sm:$0xff]  ;;  %v6007_v40 = vpack.c.bf16 %v94_v34, %v93_v33  ;;  %v22_v41 = vld [vmem:[%s7461_s0 + $0x38] sm:$0xff]  ;;  %v53_v42 = vmul.f32 0.25, %v21_v36  ;;  %v97_v43 = vld [vmem:[%s7462_s1 + $0x90] sm:$0xff] }
   0xa   :  { %5996 = vmatpush3.bf16.msra.mxu1 %v5995_v20  ;;  %5562 = vmatprep.mubr.msk.f32.mxu1 %vm6336_vm0, %v6337_v5  ;;  %v98_v44 = vld [vmem:[%s7462_s1 + $0x98] sm:$0xff]  ;;  %v6010_v45 = vpack.c.bf16 %v96_v39, %v95_v38  ;;  %v23_v46 = vld [vmem:[%s7461_s0 + $0x40] sm:$0xff]  ;;  %v54_v47 = vmul.f32 0.25, %v22_v41  ;;  %v100_v49 = vld [vmem:[%s7462_s1 + $0xa8] sm:$0xff] }
   0xb   :  { %5556 = vmatmul.mubr.msk.f32.vlgmr.msra.gmra.mrb[2].mxu0 %vm143_vm1, %v49_v22  ;;  %6000 = vmatprep.subr.bf16.mxu1 %v6335_v3  ;;  %v99_v48 = vld [vmem:[%s7462_s1 + $0xa0] sm:$0xff]  ;;  %v6013_v50 = vpack.c.bf16 %v98_v44, %v97_v43  ;;  %v24_v51 = vld [vmem:[%s7461_s0 + $0x48] sm:$0xff]  ;;  %v55_v52 = vmul.f32 0.25, %v23_v46  ;;  %v101_v53 = vld [vmem:[%s7462_s1 + $0xb0] sm:$0xff] }
   0xc   :  { %5999 = vmatpush3.bf16.msra.mxu0 %v5998_v25  ;;  %5569 = vmatprep.mubr.msk.f32.mxu0 %vm6336_vm0, %v6337_v5  ;;  %v102_v54 = vld [vmem:[%s7462_s1 + $0xb8] sm:$0xff]  ;;  %v6016_v55 = vpack.c.bf16 %v100_v49, %v99_v48  ;;  %v25_v56 = vld [vmem:[%s7461_s0 + $0x50] sm:$0xff]  ;;  %v56_v57 = vmul.f32 0.25, %v24_v51  ;;  %v103_v58 = vld [vmem:[%s7462_s1 + $0xc0] sm:$0xff] }
   0xd   :  { %5563 = vmatmul.mubr.msk.f32.vlgmr.msra.gmra.mrb[2].mxu1 %vm143_vm1, %v50_v27  ;;  %6003 = vmatprep.subr.bf16.mxu0 %v6335_v3  ;;  %v104_v59 = vld [vmem:[%s7462_s1 + $0xc8] sm:$0xff]  ;;  %v6019_v60 = vpack.c.bf16 %v102_v54, %v101_v53  ;;  %v26_v61 = vld [vmem:[%s7461_s0 + $0x58] sm:$0xff]  ;;  %v57_v62 = vmul.f32 0.25, %v25_v56  ;;  %v105_v63 = vld [vmem:[%s7462_s1 + $0xd0] sm:$0xff] }
   0xe   :  { %6002 = vmatpush3.bf16.msra.mxu1 %v6001_v30  ;;  %5576 = vmatprep.mubr.msk.f32.mxu1 %vm6336_vm0, %v6337_v5  ;;  %v106_v0 = vld [vmem:[%s7462_s1 + $0xd8] sm:$0xff]  ;;  %v6022_v1 = vpack.c.bf16 %v104_v59, %v103_v58  ;;  %v27_v2 = vld [vmem:[%s7461_s0 + $0x60] sm:$0xff]  ;;  %v58_v4 = vmul.f32 0.25, %v26_v61  ;;  %v108_v7 = vld [vmem:[%s7462_s1 + $0xe8] sm:$0xff] }
   0xf   :  { %5570 = vmatmul.mubr.msk.f32.vlgmr.msra.gmra.mrb[4].mxu0 %vm143_vm1, %v51_v32  ;;  %6006 = vmatprep.subr.bf16.mxu1 %v6335_v3  ;;  %v107_v6 = vld [vmem:[%s7462_s1 + $0xe0] sm:$0xff]  ;;  %v6025_v8 = vpack.c.bf16 %v106_v0, %v105_v63  ;;  %v28_v9 = vld [vmem:[%s7461_s0 + $0x68] sm:$0xff]  ;;  %v59_v10 = vmul.f32 0.25, %v27_v2  ;;  %v109_v11 = vld [vmem:[%s7462_s1 + $0xf0] sm:$0xff] }
  0x10   :  { %6005 = vmatpush3.bf16.msra.mxu0 %v6004_v35  ;;  %5583 = vmatprep.mubr.msk.f32.mxu0 %vm6336_vm0, %v6337_v5  ;;  %v110_v12 = vld [vmem:[%s7462_s1 + $0xf8] sm:$0xff]  ;;  %v6028_v13 = vpack.c.bf16 %v108_v7, %v107_v6  ;;  %v29_v14 = vld [vmem:[%s7461_s0 + $0x70] sm:$0xff]  ;;  %v60_v15 = vmul.f32 0.25, %v28_v9  ;;  %v111_v16 = vld [vmem:[%s7462_s1 + $0x100] sm:$0xff] }
  0x11   :  { %5577 = vmatmul.mubr.msk.f32.vlgmr.msra.gmra.mrb[4].mxu1 %vm143_vm1, %v52_v37  ;;  %6009 = vmatprep.subr.bf16.mxu0 %v6335_v3  ;;  %v112_v17 = vld [vmem:[%s7462_s1 + $0x108] sm:$0xff]  ;;  %v6031_v18 = vpack.c.bf16 %v110_v12, %v109_v11  ;;  %v30_v19 = vld [vmem:[%s7461_s0 + $0x78] sm:$0xff]  ;;  %v61_v20 = vmul.f32 0.25, %v29_v14  ;;  %v113_v21 = vld [vmem:[%s7462_s1 + $0x110] sm:$0xff] }
  0x12   :  { %6008 = vmatpush3.bf16.msra.mxu1 %v6007_v40  ;;  %5590 = vmatprep.mubr.msk.f32.mxu1 %vm6336_vm0, %v6337_v5  ;;  %v114_v22 = vld [vmem:[%s7462_s1 + $0x118] sm:$0xff]  ;;  %v6034_v23 = vpack.c.bf16 %v112_v17, %v111_v16  ;;  %v31_v24 = vld [vmem:[%s7461_s0 + $0x80] sm:$0xff]  ;;  %v62_v25 = vmul.f32 0.25, %v30_v19  ;;  %v116_v27 = vld [vmem:[%s7462_s1 + $0x128] sm:$0xff] }
  0x13   :  { %5584 = vmatmul.mubr.msk.f32.vlgmr.msra.gmra.mrb[6].mxu0 %vm143_vm1, %v53_v42  ;;  %6012 = vmatprep.subr.bf16.mxu1 %v6335_v3  ;;  %v115_v26 = vld [vmem:[%s7462_s1 + $0x120] sm:$0xff] }
  0x14   :  { %6011 = vmatpush3.bf16.msra.mxu0 %v6010_v45  ;;  %5597 = vmatprep.mubr.msk.f32.mxu0 %vm6336_vm0, %v6337_v5 }
  0x15   :  { %5591 = vmatmul.mubr.msk.f32.vlgmr.msra.gmra.mrb[6].mxu1 %vm143_vm1, %v54_v47  ;;  %6015 = vmatprep.subr.bf16.mxu0 %v6335_v3 }
  0x16   :  { %6014 = vmatpush3.bf16.msra.mxu1 %v6013_v50  ;;  %5604 = vmatprep.mubr.msk.f32.mxu1 %vm6336_vm0, %v6337_v5 }
  0x17   :  { %5598 = vmatmul.mubr.msk.f32.vlgmr.msra.gmra.mrb[8].mxu0 %vm143_vm1, %v55_v52  ;;  %6018 = vmatprep.subr.bf16.mxu1 %v6335_v3 }
  0x18   :  { %6017 = vmatpush3.bf16.msra.mxu0 %v6016_v55  ;;  %5611 = vmatprep.mubr.msk.f32.mxu0 %vm6336_vm0, %v6337_v5 }
  0x19   :  { %5605 = vmatmul.mubr.msk.f32.vlgmr.msra.gmra.mrb[8].mxu1 %vm143_vm1, %v56_v57  ;;  %6021 = vmatprep.subr.bf16.mxu0 %v6335_v3 }
  0x1a   :  { %6020 = vmatpush3.bf16.msra.mxu1 %v6019_v60  ;;  %5618 = vmatprep.mubr.msk.f32.mxu1 %vm6336_vm0, %v6337_v5 }
  0x1b   :  { %5612 = vmatmul.mubr.msk.f32.vlgmr.msra.gmra.mrb[10].mxu0 %vm143_vm1, %v57_v62  ;;  %6024 = vmatprep.subr.bf16.mxu1 %v6335_v3 }
  0x1c   :  { %6023 = vmatpush3.bf16.msra.mxu0 %v6022_v1  ;;  %5625 = vmatprep.mubr.msk.f32.mxu0 %vm6336_vm0, %v6337_v5 }
  0x1d   :  { %5619 = vmatmul.mubr.msk.f32.vlgmr.msra.gmra.mrb[10].mxu1 %vm143_vm1, %v58_v4  ;;  %6027 = vmatprep.subr.bf16.mxu0 %v6335_v3 }
  0x1e   :  { %6026 = vmatpush3.bf16.msra.mxu1 %v6025_v8  ;;  %5632 = vmatprep.mubr.msk.f32.mxu1 %vm6336_vm0, %v6337_v5 }
  0x1f   :  { %5626 = vmatmul.mubr.msk.f32.vlgmr.msra.gmra.mrb[12].mxu0 %vm143_vm1, %v59_v10  ;;  %6030 = vmatprep.subr.bf16.mxu1 %v6335_v3 }
  0x20   :  { %6029 = vmatpush3.bf16.msra.mxu0 %v6028_v13  ;;  %5639 = vmatprep.mubr.msk.f32.mxu0 %vm6336_vm0, %v6337_v5 }
  0x21   :  { %5633 = vmatmul.mubr.msk.f32.vlgmr.msra.gmra.mrb[12].mxu1 %vm143_vm1, %v60_v15  ;;  %6033 = vmatprep.subr.bf16.mxu0 %v6335_v3 }
  0x22   :  { %8 = vsyncpa [#allocation3], 0  ;;  %6032 = vmatpush3.bf16.msra.mxu1 %v6031_v18  ;;  %5646 = vmatprep.mubr.msk.f32.mxu1 %vm6336_vm0, %v6337_v5  ;;  %v6037_v28 = vpack.c.bf16 %v114_v22, %v113_v21  ;;  %v32_v29 = vld [vmem:[%s7461_s0 + $0x88] sm:$0xff]  ;;  %v63_v30 = vmul.f32 0.25, %v31_v24  ;;  %v117_v31 = vld [vmem:[%s7462_s1 + $0x130] sm:$0xff]  ;;  %v6040_v33 = vpack.c.bf16 %v116_v27, %v115_v26  ;;  %vm5232_vm2 = vcmask 261120  }
  0x23   :  { %5640 = vmatmul.mubr.msk.f32.vlgmr.msra.gmra.mrb[14].mxu0 %vm143_vm1, %v61_v20  ;;  %6036 = vmatprep.subr.bf16.mxu1 %v6335_v3  ;;  %v118_v32 = vld [vmem:[%s7462_s1 + $0x138] sm:$0xff]  ;;  %v33_v34 = vld [vmem:[%s7461_s0 + $0x90] sm:$0xff]  ;;  %v64_v35 = vmul.f32 0.25, %v32_v29  ;;  %v119_v36 = vld [vmem:[%s7462_s1 + $0x140] sm:$0xff] }
  0x24   :  { %6035 = vmatpush3.bf16.msra.mxu0 %v6034_v23  ;;  %5653 = vmatprep.mubr.msk.f32.mxu0 %vm6336_vm0, %v6337_v5  ;;  %v120_v37 = vld [vmem:[%s7462_s1 + $0x148] sm:$0xff]  ;;  %v6043_v38 = vpack.c.bf16 %v118_v32, %v117_v31  ;;  %v34_v39 = vld [vmem:[%s7461_s0 + $0x98] sm:$0xff]  ;;  %v65_v40 = vmul.f32 0.25, %v33_v34  ;;  %v121_v41 = vld [vmem:[%s7462_s1 + $0x150] sm:$0xff] }
  0x25   :  { %5647 = vmatmul.mubr.msk.f32.vlgmr.msra.gmra.mrb[14].mxu1 %vm143_vm1, %v62_v25  ;;  %6039 = vmatprep.subr.bf16.mxu0 %v6335_v3  ;;  %v122_v42 = vld [vmem:[%s7462_s1 + $0x158] sm:$0xff]  ;;  %v6046_v43 = vpack.c.bf16 %v120_v37, %v119_v36  ;;  %v35_v44 = vld [vmem:[%s7461_s0 + $0xa0] sm:$0xff]  ;;  %v66_v45 = vmul.f32 0.25, %v34_v39  ;;  %v124_v47 = vld [vmem:[%s7462_s1 + $0x168] sm:$0xff] }
  0x26   :  { %6038 = vmatpush3.bf16.msra.mxu1 %v6037_v28  ;;  %5660 = vmatprep.mubr.msk.f32.mxu1 %vm6336_vm0, %v6337_v5  ;;  %v123_v46 = vld [vmem:[%s7462_s1 + $0x160] sm:$0xff]  ;;  %v6049_v48 = vpack.c.bf16 %v122_v42, %v121_v41  ;;  %v36_v49 = vld [vmem:[%s7461_s0 + $0xa8] sm:$0xff]  ;;  %v67_v50 = vmul.f32 0.25, %v35_v44  ;;  %v125_v51 = vld [vmem:[%s7462_s1 + $0x170] sm:$0xff] }
  0x27   :  { %5654 = vmatmul.mubr.msk.f32.vlgmr.msra.gmra.mrb[16].mxu0 %vm143_vm1, %v63_v30  ;;  %6042 = vmatprep.subr.bf16.mxu1 %v6335_v3  ;;  %v126_v52 = vld [vmem:[%s7462_s1 + $0x178] sm:$0xff]  ;;  %v6052_v53 = vpack.c.bf16 %v124_v47, %v123_v46  ;;  %v37_v54 = vld [vmem:[%s7461_s0 + $0xb0] sm:$0xff]  ;;  %v68_v55 = vmul.f32 0.25, %v36_v49  ;;  %v127_v56 = vld [vmem:[%s7462_s1 + $0x180] sm:$0xff] }
  0x28   :  { %6041 = vmatpush3.bf16.msra.mxu0 %v6040_v33  ;;  %5667 = vmatprep.mubr.msk.f32.mxu0 %vm6336_vm0, %v6337_v5  ;;  %v128_v57 = vld [vmem:[%s7462_s1 + $0x188] sm:$0xff]  ;;  %v6055_v58 = vpack.c.bf16 %v126_v52, %v125_v51  ;;  %v38_v59 = vld [vmem:[%s7461_s0 + $0xb8] sm:$0xff]  ;;  %v69_v60 = vmul.f32 0.25, %v37_v54  ;;  %v129_v61 = vld [vmem:[%s7462_s1 + $0x190] sm:$0xff] }
  0x29   :  { %5661 = vmatmul.mubr.msk.f32.vlgmr.msra.gmra.mrb[16].mxu1 %vm143_vm1, %v64_v35  ;;  %6045 = vmatprep.subr.bf16.mxu0 %v6335_v3  ;;  %v130_v62 = vld [vmem:[%s7462_s1 + $0x198] sm:$0xff]  ;;  %v6058_v63 = vpack.c.bf16 %v128_v57, %v127_v56  ;;  %v39_v0 = vld [vmem:[%s7461_s0 + $0xc0] sm:$0xff]  ;;  %v70_v1 = vmul.f32 0.25, %v38_v59  ;;  %v132_v4 = vld [vmem:[%s7462_s1 + $0x1a8] sm:$0xff] }
  0x2a   :  { %6044 = vmatpush3.bf16.msra.mxu1 %v6043_v38  ;;  %5674 = vmatprep.mubr.msk.f32.mxu1 %vm6336_vm0, %v6337_v5  ;;  %v131_v2 = vld [vmem:[%s7462_s1 + $0x1a0] sm:$0xff]  ;;  %v6061_v6 = vpack.c.bf16 %v130_v62, %v129_v61  ;;  %v40_v7 = vld [vmem:[%s7461_s0 + $0xc8] sm:$0xff]  ;;  %v71_v8 = vmul.f32 0.25, %v39_v0  ;;  %v133_v9 = vld [vmem:[%s7462_s1 + $0x1b0] sm:$0xff] }
  0x2b   :  { %5668 = vmatmul.mubr.msk.f32.vlgmr.msra.gmra.mrb[18].mxu0 %vm143_vm1, %v65_v40  ;;  %6048 = vmatprep.subr.bf16.mxu1 %v6335_v3  ;;  %v134_v10 = vld [vmem:[%s7462_s1 + $0x1b8] sm:$0xff]  ;;  %v6064_v11 = vpack.c.bf16 %v132_v4, %v131_v2  ;;  %v41_v12 = vld [vmem:[%s7461_s0 + $0xd0] sm:$0xff]  ;;  %v72_v13 = vmul.f32 0.25, %v40_v7  ;;  %v135_v14 = vld [vmem:[%s7462_s1 + $0x1c0] sm:$0xff] }
  0x2c   :  { %6047 = vmatpush3.bf16.msra.mxu0 %v6046_v43  ;;  %5681 = vmatprep.mubr.msk.f32.mxu0 %vm6336_vm0, %v6337_v5  ;;  %v136_v15 = vld [vmem:[%s7462_s1 + $0x1c8] sm:$0xff]  ;;  %v6067_v16 = vpack.c.bf16 %v134_v10, %v133_v9  ;;  %v42_v17 = vld [vmem:[%s7461_s0 + $0xd8] sm:$0xff]  ;;  %v73_v18 = vmul.f32 0.25, %v41_v12  ;;  %v137_v19 = vld [vmem:[%s7462_s1 + $0x1d0] sm:$0xff] }
  0x2d   :  { %5675 = vmatmul.mubr.msk.f32.vlgmr.msra.gmra.mrb[18].mxu1 %vm143_vm1, %v66_v45  ;;  %6051 = vmatprep.subr.bf16.mxu0 %v6335_v3  ;;  %v138_v20 = vld [vmem:[%s7462_s1 + $0x1d8] sm:$0xff]  ;;  %v6070_v21 = vpack.c.bf16 %v136_v15, %v135_v14  ;;  %v43_v22 = vld [vmem:[%s7461_s0 + $0xe0] sm:$0xff]  ;;  %v74_v23 = vmul.f32 0.25, %v42_v17  ;;  %v140_v25 = vld [vmem:[%s7462_s1 + $0x1e8] sm:$0xff] }
  0x2e   :  { %6050 = vmatpush3.bf16.msra.mxu1 %v6049_v48  ;;  %5688 = vmatprep.mubr.msk.f32.mxu1 %vm6336_vm0, %v6337_v5  ;;  %v139_v24 = vld [vmem:[%s7462_s1 + $0x1e0] sm:$0xff]  ;;  %v6073_v26 = vpack.c.bf16 %v138_v20, %v137_v19  ;;  %v44_v27 = vld [vmem:[%s7461_s0 + $0xe8] sm:$0xff]  ;;  %v75_v28 = vmul.f32 0.25, %v43_v22  ;;  %v141_v29 = vld [vmem:[%s7462_s1 + $0x1f0] sm:$0xff] }
  0x2f   :  { %5682 = vmatmul.mubr.msk.f32.vlgmr.msra.gmra.mrb[20].mxu0 %vm143_vm1, %v67_v50  ;;  %6054 = vmatprep.subr.bf16.mxu1 %v6335_v3  ;;  %v142_v30 = vld [vmem:[%s7462_s1 + $0x1f8] sm:$0xff]  ;;  %v6076_v31 = vpack.c.bf16 %v140_v25, %v139_v24  ;;  %v45_v32 = vld [vmem:[%s7461_s0 + $0xf0] sm:$0xff]  ;;  %v76_v33 = vmul.f32 0.25, %v44_v27 }
  0x30   :  { %6053 = vmatpush3.bf16.msra.mxu0 %v6052_v53  ;;  %5695 = vmatprep.mubr.msk.f32.mxu0 %vm6336_vm0, %v6337_v5  ;;  %v6079_v34 = vpack.c.bf16 %v142_v30, %v141_v29  ;;  %v46_v35 = vld [vmem:[%s7461_s0 + $0xf8] sm:$0xff]  ;;  %v77_v36 = vmul.f32 0.25, %v45_v32 }
  0x31   :  { %5689 = vmatmul.mubr.msk.f32.vlgmr.msra.gmra.mrb[20].mxu1 %vm143_vm1, %v68_v55  ;;  %6057 = vmatprep.subr.bf16.mxu0 %v6335_v3  ;;  %v78_v37 = vmul.f32 0.25, %v46_v35 }
  0x32   :  { %6056 = vmatpush3.bf16.msra.mxu1 %v6055_v58  ;;  %5702 = vmatprep.mubr.msk.f32.mxu1 %vm6336_vm0, %v6337_v5 }
  0x33   :  { %5696 = vmatmul.mubr.msk.f32.vlgmr.msra.gmra.mrb[22].mxu0 %vm143_vm1, %v69_v60  ;;  %6060 = vmatprep.subr.bf16.mxu1 %v6335_v3 }
  0x34   :  { %6059 = vmatpush3.bf16.msra.mxu0 %v6058_v63  ;;  %5709 = vmatprep.mubr.msk.f32.mxu0 %vm6336_vm0, %v6337_v5 }
  0x35   :  { %5703 = vmatmul.mubr.msk.f32.vlgmr.msra.gmra.mrb[22].mxu1 %vm143_vm1, %v70_v1  ;;  %6063 = vmatprep.subr.bf16.mxu0 %v6335_v3 }
  0x36   :  { %6062 = vmatpush3.bf16.msra.mxu1 %v6061_v6  ;;  %5716 = vmatprep.mubr.msk.f32.mxu1 %vm6336_vm0, %v6337_v5 }
  0x37   :  { %5710 = vmatmul.mubr.msk.f32.vlgmr.msra.gmra.mrb[24].mxu0 %vm143_vm1, %v71_v8  ;;  %6066 = vmatprep.subr.bf16.mxu1 %v6335_v3 }
  0x38   :  { %6065 = vmatpush3.bf16.msra.mxu0 %v6064_v11  ;;  %5723 = vmatprep.mubr.msk.f32.mxu0 %vm6336_vm0, %v6337_v5 }
  0x39   :  { %5717 = vmatmul.mubr.msk.f32.vlgmr.msra.gmra.mrb[24].mxu1 %vm143_vm1, %v72_v13  ;;  %6069 = vmatprep.subr.bf16.mxu0 %v6335_v3 }
  0x3a   :  { %6068 = vmatpush3.bf16.msra.mxu1 %v6067_v16  ;;  %5730 = vmatprep.mubr.msk.f32.mxu1 %vm6336_vm0, %v6337_v5 }
  0x3b   :  { %5724 = vmatmul.mubr.msk.f32.vlgmr.msra.gmra.mrb[26].mxu0 %vm143_vm1, %v73_v18  ;;  %6072 = vmatprep.subr.bf16.mxu1 %v6335_v3 }
  0x3c   :  { %6071 = vmatpush3.bf16.msra.mxu0 %v6070_v21  ;;  %5737 = vmatprep.mubr.msk.f32.mxu0 %vm6336_vm0, %v6337_v5 }
  0x3d   :  { %5731 = vmatmul.mubr.msk.f32.vlgmr.msra.gmra.mrb[26].mxu1 %vm143_vm1, %v74_v23  ;;  %6075 = vmatprep.subr.bf16.mxu0 %v6335_v3 }
  0x3e   :  { %6074 = vmatpush3.bf16.msra.mxu1 %v6073_v26  ;;  %5744 = vmatprep.mubr.msk.f32.mxu1 %vm6336_vm0, %v6337_v5 }
  0x3f   :  { %5738 = vmatmul.mubr.msk.f32.vlgmr.msra.gmra.mrb[28].mxu0 %vm143_vm1, %v75_v28  ;;  %6078 = vmatprep.subr.bf16.mxu1 %v6335_v3 }
  0x40   :  { %6077 = vmatpush3.bf16.msra.mxu0 %v6076_v31  ;;  %5751 = vmatprep.mubr.msk.f32.mxu0 %vm6336_vm0, %v6337_v5 }
  0x41   :  { %5745 = vmatmul.mubr.msk.f32.vlgmr.msra.gmra.mrb[28].mxu1 %vm143_vm1, %v76_v33  ;;  %6081 = vmatprep.subr.bf16.mxu0 %v6335_v3 }
  0x42   :  { %6080 = vmatpush3.bf16.msra.mxu1 %v6079_v34  ;;  %5758 = vmatprep.mubr.msk.f32.mxu1 %vm6336_vm0, %v6337_v5 }
  0x43   :  { %5752 = vmatmul.mubr.msk.f32.vlgmr.msra.gmra.mrb[30].mxu0 %vm143_vm1, %v77_v36  ;;  %6084 = vmatprep.subr.bf16.mxu1 %v6335_v3 }
  0x44   :  { %5765 = vmatprep.mubr.msk.f32.mxu0 %vm6336_vm0, %v6337_v5 }
  0x45   :  { %5759 = vmatmul.mubr.msk.f32.vlgmr.msra.gmra.mrb[30].mxu1 %vm143_vm1, %v78_v37 }
  0x46   :  { %5772 = vmatprep.mubr.msk.f32.mxu1 %vm6336_vm0, %v6337_v5 }
  0xda   :  { %v6783_v38 = vpop.f32.mrb[0].mxu0 }
  0xdb   :  { %v5543_v39 = vpop.f32.mrb[1].mxu0  ;;  %v2480_v40 = vsel %vm143_vm1, %v6783_v38, -inf }
  0xdc   :  { %2481 = vmax.xlane.f32.xlu0 %v2480_v40  ;;  %v6787_v41 = vpop.f32.mrb[0].mxu1 }
  0xdd   :  { %v5550_v42 = vpop.f32.mrb[1].mxu1  ;;  %v2483_v43 = vsel %vm143_vm1, %v6787_v41, -inf }
  0xde   :  { %v6791_v44 = vpop.f32.mrb[2].mxu0 }
  0xdf   :  { %v5557_v45 = vpop.f32.mrb[3].mxu0  ;;  %v2486_v46 = vsel %vm143_vm1, %v6791_v44, -inf }
  0xe0   :  { %2484 = vmax.xlane.f32.xlu0 %v2483_v43  ;;  %2487 = vmax.xlane.f32.xlu1 %v2486_v46  ;;  %v6795_v47 = vpop.f32.mrb[2].mxu1 }
  0xe1   :  { %v5564_v48 = vpop.f32.mrb[3].mxu1  ;;  %v2489_v49 = vsel %vm143_vm1, %v6795_v47, -inf }
  0xe2   :  { %v6799_v50 = vpop.f32.mrb[4].mxu0 }
  0xe3   :  { %v2492_v51 = vsel %vm143_vm1, %v6799_v50, -inf  ;;  %v5571_v52 = vpop.f32.mrb[5].mxu0 }
  0xe4   :  { %2490 = vmax.xlane.f32.xlu1 %v2489_v49  ;;  %2493 = vmax.xlane.f32.xlu0 %v2492_v51  ;;  %v6803_v53 = vpop.f32.mrb[4].mxu1 }
  0xe5   :  { %v5578_v54 = vpop.f32.mrb[5].mxu1  ;;  %v2495_v55 = vsel %vm143_vm1, %v6803_v53, -inf }
  0xe6   :  { %v6807_v56 = vpop.f32.mrb[6].mxu0 }
  0xe7   :  { %v2498_v57 = vsel %vm143_vm1, %v6807_v56, -inf  ;;  %v5585_v58 = vpop.f32.mrb[7].mxu0 }
  0xe8   :  { %2496 = vmax.xlane.f32.xlu1 %v2495_v55  ;;  %2499 = vmax.xlane.f32.xlu0 %v2498_v57  ;;  %v6811_v59 = vpop.f32.mrb[6].mxu1 }
  0xe9   :  { %v5592_v60 = vpop.f32.mrb[7].mxu1  ;;  %v2501_v61 = vsel %vm143_vm1, %v6811_v59, -inf }
  0xea   :  { %v6815_v62 = vpop.f32.mrb[8].mxu0 }
  0xeb   :  { %v2504_v63 = vsel %vm143_vm1, %v6815_v62, -inf  ;;  %v5599_v0 = vpop.f32.mrb[9].mxu0 }
  0xec   :  { %2502 = vmax.xlane.f32.xlu1 %v2501_v61  ;;  %2505 = vmax.xlane.f32.xlu0 %v2504_v63  ;;  %v6819_v1 = vpop.f32.mrb[8].mxu1 }
  0xed   :  { %v5606_v2 = vpop.f32.mrb[9].mxu1  ;;  %v2507_v4 = vsel %vm143_vm1, %v6819_v1, -inf }
  0xee   :  { %v6823_v6 = vpop.f32.mrb[10].mxu0 }
  0xef   :  { %v2510_v7 = vsel %vm143_vm1, %v6823_v6, -inf  ;;  %v5613_v8 = vpop.f32.mrb[11].mxu0 }
  0xf0   :  { %2508 = vmax.xlane.f32.xlu1 %v2507_v4  ;;  %2511 = vmax.xlane.f32.xlu0 %v2510_v7  ;;  %v6827_v9 = vpop.f32.mrb[10].mxu1 }
  0xf1   :  { %v5620_v10 = vpop.f32.mrb[11].mxu1  ;;  %v2513_v11 = vsel %vm143_vm1, %v6827_v9, -inf }
  0xf2   :  { %v6831_v12 = vpop.f32.mrb[12].mxu0 }
  0xf3   :  { %v2516_v13 = vsel %vm143_vm1, %v6831_v12, -inf  ;;  %v5627_v14 = vpop.f32.mrb[13].mxu0 }
  0xf4   :  { %2514 = vmax.xlane.f32.xlu1 %v2513_v11  ;;  %2517 = vmax.xlane.f32.xlu0 %v2516_v13  ;;  %v6835_v15 = vpop.f32.mrb[12].mxu1 }
  0xf5   :  { %v5634_v16 = vpop.f32.mrb[13].mxu1  ;;  %v2519_v17 = vsel %vm143_vm1, %v6835_v15, -inf }
  0xf6   :  { %v6839_v18 = vpop.f32.mrb[14].mxu0 }
  0xf7   :  { %v2522_v19 = vsel %vm143_vm1, %v6839_v18, -inf  ;;  %v5641_v20 = vpop.f32.mrb[15].mxu0 }
  0xf8   :  { %2520 = vmax.xlane.f32.xlu1 %v2519_v17  ;;  %2523 = vmax.xlane.f32.xlu0 %v2522_v19  ;;  %v6843_v21 = vpop.f32.mrb[14].mxu1 }
  0xf9   :  { %v5648_v22 = vpop.f32.mrb[15].mxu1  ;;  %v2525_v23 = vsel %vm143_vm1, %v6843_v21, -inf }
  0xfa   :  { %v6847_v24 = vpop.f32.mrb[16].mxu0 }
  0xfb   :  { %v2528_v25 = vsel %vm143_vm1, %v6847_v24, -inf  ;;  %v5655_v26 = vpop.f32.mrb[17].mxu0 }
  0xfc   :  { %2526 = vmax.xlane.f32.xlu1 %v2525_v23  ;;  %2529 = vmax.xlane.f32.xlu0 %v2528_v25  ;;  %v6851_v27 = vpop.f32.mrb[16].mxu1 }
  0xfd   :  { %v5662_v28 = vpop.f32.mrb[17].mxu1  ;;  %v2531_v29 = vsel %vm143_vm1, %v6851_v27, -inf }
  0xfe   :  { %v6855_v30 = vpop.f32.mrb[18].mxu0 }
  0xff   :  { %v2534_v31 = vsel %vm143_vm1, %v6855_v30, -inf  ;;  %v5669_v32 = vpop.f32.mrb[19].mxu0 }
 0x100   :  { %2532 = vmax.xlane.f32.xlu1 %v2531_v29  ;;  %2535 = vmax.xlane.f32.xlu0 %v2534_v31  ;;  %v6859_v33 = vpop.f32.mrb[18].mxu1 }
 0x101   :  { %v5676_v34 = vpop.f32.mrb[19].mxu1  ;;  %v2537_v35 = vsel %vm143_vm1, %v6859_v33, -inf }
 0x102   :  { %v6863_v36 = vpop.f32.mrb[20].mxu0 }
 0x103   :  { %v2540_v37 = vsel %vm143_vm1, %v6863_v36, -inf  ;;  %v5683_v39 = vpop.f32.mrb[21].mxu0 }
 0x104   :  { %2538 = vmax.xlane.f32.xlu1 %v2537_v35  ;;  %2541 = vmax.xlane.f32.xlu0 %v2540_v37  ;;  %v6867_v40 = vpop.f32.mrb[20].mxu1 }
 0x105   :  { %v5690_v42 = vpop.f32.mrb[21].mxu1  ;;  %v2543_v43 = vsel %vm143_vm1, %v6867_v40, -inf }
 0x106   :  { %v6871_v45 = vpop.f32.mrb[22].mxu0 }
 0x107   :  { %v2546_v46 = vsel %vm143_vm1, %v6871_v45, -inf  ;;  %v5697_v48 = vpop.f32.mrb[23].mxu0 }
 0x108   :  { %2544 = vmax.xlane.f32.xlu1 %v2543_v43  ;;  %2547 = vmax.xlane.f32.xlu0 %v2546_v46  ;;  %v6875_v49 = vpop.f32.mrb[22].mxu1 }
 0x109   :  { %v5704_v51 = vpop.f32.mrb[23].mxu1  ;;  %v2549_v52 = vsel %vm143_vm1, %v6875_v49, -inf }
 0x10a   :  { %v6879_v54 = vpop.f32.mrb[24].mxu0 }
 0x10b   :  { %v2552_v55 = vsel %vm143_vm1, %v6879_v54, -inf  ;;  %v5711_v57 = vpop.f32.mrb[25].mxu0 }
 0x10c   :  { %2550 = vmax.xlane.f32.xlu1 %v2549_v52  ;;  %2553 = vmax.xlane.f32.xlu0 %v2552_v55  ;;  %v6883_v58 = vpop.f32.mrb[24].mxu1 }
 0x10d   :  { %v5718_v60 = vpop.f32.mrb[25].mxu1  ;;  %v2555_v61 = vsel %vm143_vm1, %v6883_v58, -inf }
 0x10e   :  { %v6887_v63 = vpop.f32.mrb[26].mxu0 }
 0x10f   :  { %v2558_v0 = vsel %vm143_vm1, %v6887_v63, -inf  ;;  %v5725_v2 = vpop.f32.mrb[27].mxu0 }
 0x110   :  { %2556 = vmax.xlane.f32.xlu1 %v2555_v61  ;;  %2559 = vmax.xlane.f32.xlu0 %v2558_v0  ;;  %v6891_v4 = vpop.f32.mrb[26].mxu1 }
 0x111   :  { %v5732_v7 = vpop.f32.mrb[27].mxu1  ;;  %v2561_v8 = vsel %vm143_vm1, %v6891_v4, -inf }
 0x112   :  { %v6895_v10 = vpop.f32.mrb[28].mxu0 }
 0x113   :  { %v2564_v11 = vsel %vm143_vm1, %v6895_v10, -inf  ;;  %v5739_v13 = vpop.f32.mrb[29].mxu0 }
 0x114   :  { %2562 = vmax.xlane.f32.xlu1 %v2561_v8  ;;  %2565 = vmax.xlane.f32.xlu0 %v2564_v11  ;;  %v6899_v14 = vpop.f32.mrb[28].mxu1 }
 0x115   :  { %v5746_v16 = vpop.f32.mrb[29].mxu1  ;;  %v2567_v17 = vsel %vm143_vm1, %v6899_v14, -inf }
 0x116   :  { %v6903_v19 = vpop.f32.mrb[30].mxu0 }
 0x117   :  { %v2570_v20 = vsel %vm143_vm1, %v6903_v19, -inf  ;;  %v5753_v22 = vpop.f32.mrb[31].mxu0 }
 0x118   :  { %2568 = vmax.xlane.f32.xlu1 %v2567_v17  ;;  %2571 = vmax.xlane.f32.xlu0 %v2570_v20  ;;  %v6907_v23 = vpop.f32.mrb[30].mxu1 }
 0x119   :  { %v5760_v25 = vpop.f32.mrb[31].mxu1  ;;  %v2573_v26 = vsel %vm143_vm1, %v6907_v23, -inf }
 0x11c   :  { %2574 = vmax.xlane.f32.xlu1 %v2573_v26 }
 0x169   :  { %v2482_v28 = vpop.xlane.xlu0 %2481 }
 0x16a   :  { %v2576_v29 = vsub.f32 %v6783_v38, %v2482_v28 }
 0x16c   :  { %v2608_v31 = vmul.f32 1.442695, %v2576_v29 }
 0x16d   :  { %v2485_v32 = vpop.xlane.xlu0 %2484  ;;  %v2488_v34 = vpop.xlane.xlu1 %2487 }
 0x16e   :  { %6183 = vpow2.f32 %v2608_v31  ;;  %v2577_v35 = vsub.f32 %v6787_v41, %v2485_v32  ;;  %v2578_v37 = vsub.f32 %v6791_v44, %v2488_v34 }
 0x170   :  { %v2610_v39 = vmul.f32 1.442695, %v2577_v35  ;;  %v2612_v42 = vmul.f32 1.442695, %v2578_v37 }
 0x171   :  { %v2491_v43 = vpop.xlane.xlu1 %2490  ;;  %v2494_v46 = vpop.xlane.xlu0 %2493 }
 0x172   :  { %6185 = vpow2.f32 %v2610_v39  ;;  %v2579_v48 = vsub.f32 %v6795_v47, %v2491_v43  ;;  %v2580_v51 = vsub.f32 %v6799_v50, %v2494_v46 }
 0x173   :  { %6187 = vpow2.f32 %v2612_v42 }
 0x174   :  { %v2614_v52 = vmul.f32 1.442695, %v2579_v48  ;;  %v2616_v38 = vmul.f32 1.442695, %v2580_v51 }
 0x175   :  { %v2497_v55 = vpop.xlane.xlu1 %2496  ;;  %v2500_v57 = vpop.xlane.xlu0 %2499 }
 0x176   :  { %6189 = vpow2.f32 %v2614_v52  ;;  %v2581_v60 = vsub.f32 %v6803_v53, %v2497_v55  ;;  %v2582_v41 = vsub.f32 %v6807_v56, %v2500_v57 }
 0x177   :  { %6191 = vpow2.f32 %v2616_v38 }
 0x178   :  { %v6918_v44 = vpop.eup %6183  ;;  %v2618_v61 = vmul.f32 1.442695, %v2581_v60  ;;  %v2620_v0 = vmul.f32 1.442695, %v2582_v41 }
 0x179   :  { %v2503_v2 = vpop.xlane.xlu1 %2502  ;;  %v2506_v7 = vpop.xlane.xlu0 %2505  ;;  %v2672_v47 = vsel %vm143_vm1, %v6918_v44, 0.0 }
 0x17a   :  { %6193 = vpow2.f32 %v2618_v61  ;;  %v2583_v50 = vsub.f32 %v6811_v59, %v2503_v2  ;;  %v2584_v8 = vsub.f32 %v6815_v62, %v2506_v7  ;;  %2673 = vadd.xlane.f32.xlu0 %v2672_v47 }
 0x17b   :  { %6195 = vpow2.f32 %v2620_v0 }
 0x17c   :  { %v6924_v53 = vpop.eup %6185  ;;  %v2622_v56 = vmul.f32 1.442695, %v2583_v50  ;;  %v2624_v11 = vmul.f32 1.442695, %v2584_v8 }
 0x17d   :  { %v6926_v13 = vpop.eup %6187  ;;  %v2509_v16 = vpop.xlane.xlu1 %2508  ;;  %v2675_v20 = vsel %vm143_vm1, %v6924_v53, 0.0 }
 0x17e   :  { %v2512_v17 = vpop.xlane.xlu0 %2511  ;;  %6197 = vpow2.f32 %v2622_v56  ;;  %v2585_v22 = vsub.f32 %v6819_v1, %v2509_v16  ;;  %2676 = vadd.xlane.f32.xlu1 %v2675_v20  ;;  %v2678_v62 = vsel %vm143_vm1, %v6926_v13, 0.0 }
 0x17f   :  { %v2586_v59 = vsub.f32 %v6823_v6, %v2512_v17  ;;  %6199 = vpow2.f32 %v2624_v11  ;;  %2679 = vadd.xlane.f32.xlu0 %v2678_v62  ;;  %v2832_v62 = vld [vmem:[%s7463_s2] sm:$0xff] }
 0x180   :  { %v6934_v25 = vpop.eup %6189  ;;  %v2626_v26 = vmul.f32 1.442695, %v2585_v22 }
 0x181   :  { %v2628_v28 = vmul.f32 1.442695, %v2586_v59  ;;  %v6936_v29 = vpop.eup %6191  ;;  %v2515_v31 = vpop.xlane.xlu1 %2514  ;;  %v2681_v34 = vsel %vm143_vm1, %v6934_v25, 0.0 }
 0x182   :  { %v2518_v32 = vpop.xlane.xlu0 %2517  ;;  %6201 = vpow2.f32 %v2626_v26  ;;  %v2587_v1 = vsub.f32 %v6827_v9, %v2515_v31  ;;  %2682 = vadd.xlane.f32.xlu1 %v2681_v34  ;;  %v2684_v35 = vsel %vm143_vm1, %v6936_v29, 0.0 }
 0x183   :  { %v2588_v6 = vsub.f32 %v6831_v12, %v2518_v32  ;;  %6203 = vpow2.f32 %v2628_v28  ;;  %2685 = vadd.xlane.f32.xlu0 %v2684_v35 }
 0x184   :  { %v6944_v37 = vpop.eup %6193  ;;  %v2630_v39 = vmul.f32 1.442695, %v2587_v1 }
 0x185   :  { %v2632_v42 = vmul.f32 1.442695, %v2588_v6  ;;  %v6946_v43 = vpop.eup %6195  ;;  %v2521_v46 = vpop.xlane.xlu1 %2520  ;;  %v2687_v51 = vsel %vm143_vm1, %v6944_v37, 0.0 }
 0x186   :  { %v2524_v48 = vpop.xlane.xlu0 %2523  ;;  %6205 = vpow2.f32 %v2630_v39  ;;  %v2589_v9 = vsub.f32 %v6835_v15, %v2521_v46  ;;  %2688 = vadd.xlane.f32.xlu1 %v2687_v51  ;;  %v2690_v52 = vsel %vm143_vm1, %v6946_v43, 0.0  ;;  %v2834_v46 = vld [vmem:[%s7463_s2 + $0x10] sm:$0xff] }
 0x187   :  { %v2590_v12 = vsub.f32 %v6839_v18, %v2524_v48  ;;  %6207 = vpow2.f32 %v2632_v42  ;;  %2691 = vadd.xlane.f32.xlu0 %v2690_v52 }
 0x188   :  { %v6954_v38 = vpop.eup %6197  ;;  %v2634_v55 = vmul.f32 1.442695, %v2589_v9 }
 0x189   :  { %v2636_v57 = vmul.f32 1.442695, %v2590_v12  ;;  %v6956_v60 = vpop.eup %6199  ;;  %v2527_v41 = vpop.xlane.xlu1 %2526  ;;  %v2693_v0 = vsel %vm143_vm1, %v6954_v38, 0.0 }
 0x18a   :  { %v2530_v61 = vpop.xlane.xlu0 %2529  ;;  %6209 = vpow2.f32 %v2634_v55  ;;  %v2591_v15 = vsub.f32 %v6843_v21, %v2527_v41  ;;  %2694 = vadd.xlane.f32.xlu1 %v2693_v0  ;;  %v2696_v2 = vsel %vm143_vm1, %v6956_v60, 0.0 }
 0x18b   :  { %v2592_v18 = vsub.f32 %v6847_v24, %v2530_v61  ;;  %6211 = vpow2.f32 %v2636_v57  ;;  %2697 = vadd.xlane.f32.xlu0 %v2696_v2 }
 0x18c   :  { %v6964_v7 = vpop.eup %6201  ;;  %v2638_v47 = vmul.f32 1.442695, %v2591_v15 }
 0x18d   :  { %v2640_v50 = vmul.f32 1.442695, %v2592_v18  ;;  %v6966_v8 = vpop.eup %6203  ;;  %v2533_v56 = vpop.xlane.xlu1 %2532  ;;  %v2699_v16 = vsel %vm143_vm1, %v6964_v7, 0.0 }
 0x18e   :  { %v2536_v11 = vpop.xlane.xlu0 %2535  ;;  %6213 = vpow2.f32 %v2638_v47  ;;  %v2593_v21 = vsub.f32 %v6851_v27, %v2533_v56  ;;  %2700 = vadd.xlane.f32.xlu1 %v2699_v16  ;;  %v2702_v17 = vsel %vm143_vm1, %v6966_v8, 0.0  ;;  %v2833_v27 = vld [vmem:[%s7463_s2 + $0x8] sm:$0xff] }
 0x18f   :  { %v2594_v24 = vsub.f32 %v6855_v30, %v2536_v11  ;;  %6215 = vpow2.f32 %v2640_v50  ;;  %2703 = vadd.xlane.f32.xlu0 %v2702_v17  ;;  %v6082_v32 = vpack.c.bf16 %v2833_v27, %v2832_v62 }
 0x190   :  { %v6974_v20 = vpop.eup %6205  ;;  %v2642_v22 = vmul.f32 1.442695, %v2593_v21 }
 0x191   :  { %v2644_v59 = vmul.f32 1.442695, %v2594_v24  ;;  %v6982_v26 = vpop.eup %6207  ;;  %v2539_v30 = vpop.xlane.xlu1 %2538  ;;  %v2705_v31 = vsel %vm143_vm1, %v6974_v20, 0.0  ;;  %6083 = vmatpush3.bf16.msra.mxu0 %v6082_v32 }
 0x192   :  { %v2542_v28 = vpop.xlane.xlu0 %2541  ;;  %6217 = vpow2.f32 %v2642_v22  ;;  %v2595_v34 = vsub.f32 %v6859_v33, %v2539_v30  ;;  %2706 = vadd.xlane.f32.xlu1 %v2705_v31  ;;  %v2708_v6 = vsel %vm143_vm1, %v6982_v26, 0.0  ;;  %6087 = vmatprep.subr.bf16.mxu0 %v6335_v3  ;;  %v2835_v33 = vld [vmem:[%s7463_s2 + $0x18] sm:$0xff] }
 0x193   :  { %v2596_v1 = vsub.f32 %v6863_v36, %v2542_v28  ;;  %6219 = vpow2.f32 %v2644_v59  ;;  %2709 = vadd.xlane.f32.xlu0 %v2708_v6  ;;  %v6085_v12 = vpack.c.bf16 %v2835_v33, %v2834_v46 }
 0x194   :  { %v6990_v35 = vpop.eup %6209  ;;  %v2646_v39 = vmul.f32 1.442695, %v2595_v34 }
 0x195   :  { %v2648_v42 = vmul.f32 1.442695, %v2596_v1  ;;  %v6999_v36 = vpop.eup %6211  ;;  %v2545_v48 = vpop.xlane.xlu1 %2544  ;;  %v2711_v9 = vsel %vm143_vm1, %v6990_v35, 0.0  ;;  %6086 = vmatpush3.bf16.msra.mxu1 %v6085_v12 }
 0x196   :  { %v2548_v51 = vpop.xlane.xlu0 %2547  ;;  %6221 = vpow2.f32 %v2646_v39  ;;  %v2597_v52 = vsub.f32 %v6867_v40, %v2545_v48  ;;  %2712 = vadd.xlane.f32.xlu1 %v2711_v9  ;;  %v2714_v57 = vsel %vm143_vm1, %v6999_v36, 0.0  ;;  %6090 = vmatprep.subr.bf16.mxu1 %v6335_v3 }
 0x197   :  { %v2598_v55 = vsub.f32 %v6871_v45, %v2548_v51  ;;  %6223 = vpow2.f32 %v2648_v42  ;;  %2715 = vadd.xlane.f32.xlu0 %v2714_v57 }
 0x198   :  { %v7007_v41 = vpop.eup %6213  ;;  %v2650_v61 = vmul.f32 1.442695, %v2597_v52 }
 0x199   :  { %v2652_v0 = vmul.f32 1.442695, %v2598_v55  ;;  %v7010_v15 = vpop.eup %6215  ;;  %v2551_v18 = vpop.xlane.xlu1 %2550  ;;  %v2717_v40 = vsel %vm143_vm1, %v7007_v41, 0.0 }
 0x19a   :  { %v2554_v2 = vpop.xlane.xlu0 %2553  ;;  %6225 = vpow2.f32 %v2650_v61  ;;  %v2599_v45 = vsub.f32 %v6875_v49, %v2551_v18  ;;  %2718 = vadd.xlane.f32.xlu1 %v2717_v40  ;;  %v2720_v50 = vsel %vm143_vm1, %v7010_v15, 0.0 }
 0x19b   :  { %v2600_v47 = vsub.f32 %v6879_v54, %v2554_v2  ;;  %6227 = vpow2.f32 %v2652_v0  ;;  %2721 = vadd.xlane.f32.xlu0 %v2720_v50 }
 0x19c   :  { %v7018_v56 = vpop.eup %6217  ;;  %v2654_v11 = vmul.f32 1.442695, %v2599_v45 }
 0x19d   :  { %v2656_v16 = vmul.f32 1.442695, %v2600_v47  ;;  %v7020_v21 = vpop.eup %6219  ;;  %v2557_v24 = vpop.xlane.xlu1 %2556  ;;  %v2723_v22 = vsel %vm143_vm1, %v7018_v56, 0.0 }
 0x19e   :  { %v2560_v17 = vpop.xlane.xlu0 %2559  ;;  %6229 = vpow2.f32 %v2654_v11  ;;  %v2601_v49 = vsub.f32 %v6883_v58, %v2557_v24  ;;  %2724 = vadd.xlane.f32.xlu1 %v2723_v22  ;;  %v2726_v59 = vsel %vm143_vm1, %v7020_v21, 0.0 }
 0x19f   :  { %v2602_v54 = vsub.f32 %v6887_v63, %v2560_v17  ;;  %6231 = vpow2.f32 %v2656_v16  ;;  %2727 = vadd.xlane.f32.xlu0 %v2726_v59 }
 0x1a0   :  { %v7028_v62 = vpop.eup %6221  ;;  %v2658_v27 = vmul.f32 1.442695, %v2601_v49 }
 0x1a1   :  { %v2660_v30 = vmul.f32 1.442695, %v2602_v54  ;;  %v7030_v28 = vpop.eup %6223  ;;  %v2563_v31 = vpop.xlane.xlu1 %2562  ;;  %v2729_v34 = vsel %vm143_vm1, %v7028_v62, 0.0 }
 0x1a2   :  { %v2566_v32 = vpop.xlane.xlu0 %2565  ;;  %6233 = vpow2.f32 %v2658_v27  ;;  %v2603_v58 = vsub.f32 %v6891_v4, %v2563_v31  ;;  %2730 = vadd.xlane.f32.xlu1 %v2729_v34  ;;  %v2732_v1 = vsel %vm143_vm1, %v7030_v28, 0.0  ;;  %v2836_v34 = vld [vmem:[%s7463_s2 + $0x20] sm:$0xff] }
 0x1a3   :  { %v2604_v63 = vsub.f32 %v6895_v10, %v2566_v32  ;;  %6235 = vpow2.f32 %v2660_v30  ;;  %2733 = vadd.xlane.f32.xlu0 %v2732_v1 }
 0x1a4   :  { %v7038_v6 = vpop.eup %6225  ;;  %v2662_v39 = vmul.f32 1.442695, %v2603_v58  ;;  %v2837_v58 = vld [vmem:[%s7463_s2 + $0x28] sm:$0xff] }
 0x1a5   :  { %v2664_v42 = vmul.f32 1.442695, %v2604_v63  ;;  %v7040_v46 = vpop.eup %6227  ;;  %v2569_v33 = vpop.xlane.xlu1 %2568  ;;  %v2735_v51 = vsel %vm143_vm1, %v7038_v6, 0.0 }
 0x1a6   :  { %v2572_v48 = vpop.xlane.xlu0 %2571  ;;  %6237 = vpow2.f32 %v2662_v39  ;;  %v2605_v4 = vsub.f32 %v6899_v14, %v2569_v33  ;;  %2736 = vadd.xlane.f32.xlu1 %v2735_v51  ;;  %v2738_v9 = vsel %vm143_vm1, %v7040_v46, 0.0  ;;  %v6088_v39 = vpack.c.bf16 %v2837_v58, %v2836_v34  ;;  %v2839_v51 = vld [vmem:[%s7463_s2 + $0x38] sm:$0xff]  ;;  %v2849_v58 = vld [vmem:[%s7463_s2 + $0x88] sm:$0xff] }
 0x1a7   :  { %v2606_v10 = vsub.f32 %v6903_v19, %v2572_v48  ;;  %6239 = vpow2.f32 %v2664_v42  ;;  %2739 = vadd.xlane.f32.xlu0 %v2738_v9  ;;  %v2838_v48 = vld [vmem:[%s7463_s2 + $0x30] sm:$0xff]  ;;  %v2841_v9 = vld [vmem:[%s7463_s2 + $0x48] sm:$0xff] }
 0x1a8   :  { %v7048_v12 = vpop.eup %6229  ;;  %v2666_v52 = vmul.f32 1.442695, %v2605_v4 }
 0x1a9   :  { %v2668_v55 = vmul.f32 1.442695, %v2606_v10  ;;  %v7050_v57 = vpop.eup %6231  ;;  %v2575_v61 = vpop.xlane.xlu1 %2574  ;;  %v2741_v0 = vsel %vm143_vm1, %v7048_v12, 0.0  ;;  %v2840_v10 = vld [vmem:[%s7463_s2 + $0x40] sm:$0xff] }
 0x1aa   :  { %6241 = vpow2.f32 %v2666_v52  ;;  %v2607_v14 = vsub.f32 %v6907_v23, %v2575_v61  ;;  %2742 = vadd.xlane.f32.xlu1 %v2741_v0  ;;  %v2744_v19 = vsel %vm143_vm1, %v7050_v57, 0.0  ;;  %v6091_v52 = vpack.c.bf16 %v2839_v51, %v2838_v48  ;;  %v2850_v48 = vld [vmem:[%s7463_s2 + $0x90] sm:$0xff]  ;;  %v2851_v51 = vld [vmem:[%s7463_s2 + $0x98] sm:$0xff] }
 0x1ab   :  { %6243 = vpow2.f32 %v2668_v55  ;;  %2745 = vadd.xlane.f32.xlu0 %v2744_v19  ;;  %v2842_v19 = vld [vmem:[%s7463_s2 + $0x50] sm:$0xff] }
 0x1ac   :  { %v7057_v18 = vpop.eup %6233  ;;  %v2670_v2 = vmul.f32 1.442695, %v2607_v14  ;;  %v6094_v14 = vpack.c.bf16 %v2841_v9, %v2840_v10  ;;  %v2853_v9 = vld [vmem:[%s7463_s2 + $0xa8] sm:$0xff] }
 0x1ad   :  { %v7059_v40 = vpop.eup %6235  ;;  %v2747_v45 = vsel %vm143_vm1, %v7057_v18, 0.0 }
 0x1ae   :  { %6245 = vpow2.f32 %v2670_v2  ;;  %2748 = vadd.xlane.f32.xlu1 %v2747_v45  ;;  %v2750_v47 = vsel %vm143_vm1, %v7059_v40, 0.0  ;;  %v2843_v2 = vld [vmem:[%s7463_s2 + $0x58] sm:$0xff] }
 0x1af   :  { %2751 = vadd.xlane.f32.xlu0 %v2750_v47 }
 0x1b0   :  { %v7065_v23 = vpop.eup %6237 }
 0x1b1   :  { %v7067_v50 = vpop.eup %6239  ;;  %v2753_v11 = vsel %vm143_vm1, %v7065_v23, 0.0 }
 0x1b2   :  { %2754 = vadd.xlane.f32.xlu1 %v2753_v11  ;;  %v2756_v16 = vsel %vm143_vm1, %v7067_v50, 0.0  ;;  %v2845_v11 = vld [vmem:[%s7463_s2 + $0x68] sm:$0xff] }
 0x1b3   :  { %2757 = vadd.xlane.f32.xlu0 %v2756_v16 }
 0x1b4   :  { %v7073_v24 = vpop.eup %6241 }
 0x1b5   :  { %v7075_v17 = vpop.eup %6243  ;;  %v2759_v22 = vsel %vm143_vm1, %v7073_v24, 0.0 }
 0x1b6   :  { %2760 = vadd.xlane.f32.xlu1 %v2759_v22  ;;  %v2762_v49 = vsel %vm143_vm1, %v7075_v17, 0.0  ;;  %v6097_v22 = vpack.c.bf16 %v2843_v2, %v2842_v19  ;;  %v2855_v19 = vld [vmem:[%s7463_s2 + $0xb8] sm:$0xff] }
 0x1b7   :  { %2763 = vadd.xlane.f32.xlu0 %v2762_v49 }
 0x1b8   :  { %v7081_v54 = vpop.eup %6245 }
 0x1b9   :  { %v2765_v59 = vsel %vm143_vm1, %v7081_v54, 0.0 }
 0x1ba   :  { %2766 = vadd.xlane.f32.xlu1 %v2765_v59 }
 0x207   :  { %v2674_v27 = vpop.xlane.xlu0 %2673 }
 0x208   :  { %6247 = vrcp.f32 %v2674_v27 }
 0x20b   :  { %v2677_v30 = vpop.xlane.xlu1 %2676 }
 0x20c   :  { %6249 = vrcp.f32 %v2677_v30  ;;  %v2680_v31 = vpop.xlane.xlu0 %2679  ;;  %v2846_v30 = vld [vmem:[%s7463_s2 + $0x70] sm:$0xff] }
 0x20d   :  { %6251 = vrcp.f32 %v2680_v31  ;;  %v2847_v31 = vld [vmem:[%s7463_s2 + $0x78] sm:$0xff] }
 0x20f   :  { %v2683_v32 = vpop.xlane.xlu1 %2682 }
 0x210   :  { %6253 = vrcp.f32 %v2683_v32  ;;  %v2686_v63 = vpop.xlane.xlu0 %2685 }
 0x211   :  { %6255 = vrcp.f32 %v2686_v63  ;;  %v6103_v63 = vpack.c.bf16 %v2847_v31, %v2846_v30  ;;  %v2861_v31 = vld [vmem:[%s7463_s2 + $0xe8] sm:$0xff] }
 0x212   :  { %v6248_v1 = vpop.eup %6247 }
 0x213   :  { %v2800_v42 = vmul.f32 %v6248_v1, %v6918_v44  ;;  %v2689_v33 = vpop.xlane.xlu1 %2688 }
 0x214   :  { %6257 = vrcp.f32 %v2689_v33  ;;  %v2692_v4 = vpop.xlane.xlu0 %2691 }
 0x215   :  { %6259 = vrcp.f32 %v2692_v4  ;;  %5766 = vmatmul.mubr.msk.f32.vlgmr.msra.gmra.mrb[32].mxu0 %vm143_vm1, %v2800_v42 }
 0x216   :  { %v6250_v44 = vpop.eup %6249  ;;  %6089 = vmatpush3.bf16.msra.mxu0 %v6088_v39  ;;  %5779 = vmatprep.mubr.msk.f32.mxu0 %vm6336_vm0, %v6337_v5 }
 0x217   :  { %v6252_v55 = vpop.eup %6251  ;;  %v2801_v61 = vmul.f32 %v6250_v44, %v6924_v53  ;;  %v2695_v0 = vpop.xlane.xlu1 %2694  ;;  %6093 = vmatprep.subr.bf16.mxu0 %v6335_v3  ;;  %v2844_v53 = vld [vmem:[%s7463_s2 + $0x60] sm:$0xff]  ;;  %v6109_v44 = vpack.c.bf16 %v2851_v51, %v2850_v48 }
 0x218   :  { %v2802_v45 = vmul.f32 %v6252_v55, %v6926_v13  ;;  %6261 = vrcp.f32 %v2695_v0  ;;  %v2698_v47 = vpop.xlane.xlu0 %2697  ;;  %v6100_v27 = vpack.c.bf16 %v2845_v11, %v2844_v53 }
 0x219   :  { %6263 = vrcp.f32 %v2698_v47  ;;  %5773 = vmatmul.mubr.msk.f32.vlgmr.msra.gmra.mrb[32].mxu1 %vm143_vm1, %v2801_v61  ;;  %v2857_v47 = vld [vmem:[%s7463_s2 + $0xc8] sm:$0xff] }
 0x21a   :  { %v6254_v16 = vpop.eup %6253  ;;  %5780 = vmatmul.mubr.msk.f32.vlgmr.msra.gmra.mrb[34].mxu0 %vm143_vm1, %v2802_v45  ;;  %6092 = vmatpush3.bf16.msra.mxu1 %v6091_v52 }
 0x21b   :  { %v6256_v49 = vpop.eup %6255  ;;  %v2803_v13 = vmul.f32 %v6254_v16, %v6934_v25  ;;  %6095 = vmatpush3.bf16.msra.mxu0 %v6094_v14  ;;  %v2701_v59 = vpop.xlane.xlu1 %2700  ;;  %5786 = vmatprep.mubr.msk.f32.mxu1 %vm6336_vm0, %v6337_v5  ;;  %v2848_v25 = vld [vmem:[%s7463_s2 + $0x80] sm:$0xff]  ;;  %v2854_v14 = vld [vmem:[%s7463_s2 + $0xb0] sm:$0xff] }
 0x21c   :  { %v2804_v32 = vmul.f32 %v6256_v49, %v6936_v29  ;;  %6265 = vrcp.f32 %v2701_v59  ;;  %v2704_v34 = vpop.xlane.xlu0 %2703  ;;  %5793 = vmatprep.mubr.msk.f32.mxu0 %vm6336_vm0, %v6337_v5  ;;  %6096 = vmatprep.subr.bf16.mxu1 %v6335_v3  ;;  %v6106_v33 = vpack.c.bf16 %v2849_v58, %v2848_v25  ;;  %v6115_v53 = vpack.c.bf16 %v2855_v19, %v2854_v14  ;;  %v2859_v59 = vld [vmem:[%s7463_s2 + $0xd8] sm:$0xff] }
 0x21d   :  { %6267 = vrcp.f32 %v2704_v34  ;;  %5787 = vmatmul.mubr.msk.f32.vlgmr.msra.gmra.mrb[34].mxu1 %vm143_vm1, %v2803_v13  ;;  %6099 = vmatprep.subr.bf16.mxu0 %v6335_v3  ;;  %v2858_v13 = vld [vmem:[%s7463_s2 + $0xd0] sm:$0xff] }
 0x21e   :  { %v6258_v29 = vpop.eup %6257  ;;  %5794 = vmatmul.mubr.msk.f32.vlgmr.msra.gmra.mrb[36].mxu0 %vm143_vm1, %v2804_v32  ;;  %6098 = vmatpush3.bf16.msra.mxu1 %v6097_v22  ;;  %v6121_v32 = vpack.c.bf16 %v2859_v59, %v2858_v13  ;;  %v2874_v59 = vld [vmem:[%s7463_s2 + $0x150] sm:$0xff] }
 0x21f   :  { %v6260_v1 = vpop.eup %6259  ;;  %v2805_v39 = vmul.f32 %v6258_v29, %v6944_v37  ;;  %6101 = vmatpush3.bf16.msra.mxu0 %v6100_v27  ;;  %v2707_v42 = vpop.xlane.xlu1 %2706  ;;  %5800 = vmatprep.mubr.msk.f32.mxu1 %vm6336_vm0, %v6337_v5  ;;  %v2852_v37 = vld [vmem:[%s7463_s2 + $0xa0] sm:$0xff] }
 0x220   :  { %v2806_v4 = vmul.f32 %v6260_v1, %v6946_v43  ;;  %6269 = vrcp.f32 %v2707_v42  ;;  %v2710_v10 = vpop.xlane.xlu0 %2709  ;;  %5807 = vmatprep.mubr.msk.f32.mxu0 %vm6336_vm0, %v6337_v5  ;;  %6102 = vmatprep.subr.bf16.mxu1 %v6335_v3  ;;  %v6112_v0 = vpack.c.bf16 %v2853_v9, %v2852_v37  ;;  %v2863_v1 = vld [vmem:[%s7463_s2 + $0xf8] sm:$0xff]  ;;  %v2866_v9 = vld [vmem:[%s7463_s2 + $0x110] sm:$0xff] }
 0x221   :  { %6271 = vrcp.f32 %v2710_v10  ;;  %5801 = vmatmul.mubr.msk.f32.vlgmr.msra.gmra.mrb[36].mxu1 %vm143_vm1, %v2805_v39  ;;  %6105 = vmatprep.subr.bf16.mxu0 %v6335_v3 }
 0x222   :  { %v6262_v43 = vpop.eup %6261  ;;  %5808 = vmatmul.mubr.msk.f32.vlgmr.msra.gmra.mrb[38].mxu0 %vm143_vm1, %v2806_v4  ;;  %6104 = vmatpush3.bf16.msra.mxu1 %v6103_v63  ;;  %v2862_v63 = vld [vmem:[%s7463_s2 + $0xf0] sm:$0xff] }
 0x223   :  { %v6264_v52 = vpop.eup %6263  ;;  %v2807_v55 = vmul.f32 %v6262_v43, %v6954_v38  ;;  %6107 = vmatpush3.bf16.msra.mxu0 %v6106_v33  ;;  %v2713_v61 = vpop.xlane.xlu1 %2712  ;;  %5814 = vmatprep.mubr.msk.f32.mxu1 %vm6336_vm0, %v6337_v5  ;;  %v2856_v38 = vld [vmem:[%s7463_s2 + $0xc0] sm:$0xff]  ;;  %v2865_v33 = vld [vmem:[%s7463_s2 + $0x108] sm:$0xff]  ;;  %v6127_v48 = vpack.c.bf16 %v2863_v1, %v2862_v63  ;;  %v2867_v43 = vld [vmem:[%s7463_s2 + $0x118] sm:$0xff] }
 0x224   :  { %v2808_v2 = vmul.f32 %v6264_v52, %v6956_v60  ;;  %6273 = vrcp.f32 %v2713_v61  ;;  %v2716_v45 = vpop.xlane.xlu0 %2715  ;;  %5821 = vmatprep.mubr.msk.f32.mxu0 %vm6336_vm0, %v6337_v5  ;;  %6108 = vmatprep.subr.bf16.mxu1 %v6335_v3  ;;  %v6118_v49 = vpack.c.bf16 %v2857_v47, %v2856_v38  ;;  %v6133_v61 = vpack.c.bf16 %v2867_v43, %v2866_v9  ;;  %v2871_v38 = vld [vmem:[%s7463_s2 + $0x138] sm:$0xff]  ;;  %v2885_v43 = vld [vmem:[%s7463_s2 + $0x1a8] sm:$0xff] }
 0x225   :  { %6275 = vrcp.f32 %v2716_v45  ;;  %5815 = vmatmul.mubr.msk.f32.vlgmr.msra.gmra.mrb[38].mxu1 %vm143_vm1, %v2807_v55  ;;  %6111 = vmatprep.subr.bf16.mxu0 %v6335_v3  ;;  %v2869_v55 = vld [vmem:[%s7463_s2 + $0x128] sm:$0xff]  ;;  %v2870_v45 = vld [vmem:[%s7463_s2 + $0x130] sm:$0xff]  ;;  %v2879_v63 = vld [vmem:[%s7463_s2 + $0x178] sm:$0xff] }
 0x226   :  { %v6266_v60 = vpop.eup %6265  ;;  %5822 = vmatmul.mubr.msk.f32.vlgmr.msra.gmra.mrb[40].mxu0 %vm143_vm1, %v2808_v2  ;;  %6110 = vmatpush3.bf16.msra.mxu1 %v6109_v44 }
 0x227   :  { %v6268_v11 = vpop.eup %6267  ;;  %v2809_v16 = vmul.f32 %v6266_v60, %v6964_v7  ;;  %6113 = vmatpush3.bf16.msra.mxu0 %v6112_v0  ;;  %v2719_v22 = vpop.xlane.xlu1 %2718  ;;  %5828 = vmatprep.mubr.msk.f32.mxu1 %vm6336_vm0, %v6337_v5  ;;  %v2860_v7 = vld [vmem:[%s7463_s2 + $0xe0] sm:$0xff] }
 0x228   :  { %v2810_v27 = vmul.f32 %v6268_v11, %v6966_v8  ;;  %6277 = vrcp.f32 %v2719_v22  ;;  %v2722_v30 = vpop.xlane.xlu0 %2721  ;;  %5835 = vmatprep.mubr.msk.f32.mxu0 %vm6336_vm0, %v6337_v5  ;;  %6114 = vmatprep.subr.bf16.mxu1 %v6335_v3  ;;  %v6124_v29 = vpack.c.bf16 %v2861_v31, %v2860_v7  ;;  %v6139_v11 = vpack.c.bf16 %v2871_v38, %v2870_v45  ;;  %v2877_v31 = vld [vmem:[%s7463_s2 + $0x168] sm:$0xff] }
 0x229   :  { %6279 = vrcp.f32 %v2722_v30  ;;  %5829 = vmatmul.mubr.msk.f32.vlgmr.msra.gmra.mrb[40].mxu1 %vm143_vm1, %v2809_v16  ;;  %6117 = vmatprep.subr.bf16.mxu0 %v6335_v3 }
 0x22a   :  { %v6270_v8 = vpop.eup %6269  ;;  %5836 = vmatmul.mubr.msk.f32.vlgmr.msra.gmra.mrb[42].mxu0 %vm143_vm1, %v2810_v27  ;;  %6116 = vmatpush3.bf16.msra.mxu1 %v6115_v53  ;;  %v2873_v53 = vld [vmem:[%s7463_s2 + $0x148] sm:$0xff]  ;;  %v2875_v27 = vld [vmem:[%s7463_s2 + $0x158] sm:$0xff] }
 0x22b   :  { %v6272_v34 = vpop.eup %6271  ;;  %v2811_v25 = vmul.f32 %v6270_v8, %v6974_v20  ;;  %6119 = vmatpush3.bf16.msra.mxu0 %v6118_v49  ;;  %v2725_v58 = vpop.xlane.xlu1 %2724  ;;  %5842 = vmatprep.mubr.msk.f32.mxu1 %vm6336_vm0, %v6337_v5  ;;  %v2864_v20 = vld [vmem:[%s7463_s2 + $0x100] sm:$0xff]  ;;  %v6145_v8 = vpack.c.bf16 %v2875_v27, %v2874_v59  ;;  %v2894_v27 = vld [vmem:[%s7463_s2 + $0x1f0] sm:$0xff] }
 0x22c   :  { %v2812_v39 = vmul.f32 %v6272_v34, %v6982_v26  ;;  %6281 = vrcp.f32 %v2725_v58  ;;  %v2728_v42 = vpop.xlane.xlu0 %2727  ;;  %5849 = vmatprep.mubr.msk.f32.mxu0 %vm6336_vm0, %v6337_v5  ;;  %6120 = vmatprep.subr.bf16.mxu1 %v6335_v3  ;;  %v6130_v37 = vpack.c.bf16 %v2865_v33, %v2864_v20 }
 0x22d   :  { %6283 = vrcp.f32 %v2728_v42  ;;  %5843 = vmatmul.mubr.msk.f32.vlgmr.msra.gmra.mrb[42].mxu1 %vm143_vm1, %v2811_v25  ;;  %6123 = vmatprep.subr.bf16.mxu0 %v6335_v3  ;;  %v2881_v42 = vld [vmem:[%s7463_s2 + $0x188] sm:$0xff] }
 0x22e   :  { %v6274_v26 = vpop.eup %6273  ;;  %5850 = vmatmul.mubr.msk.f32.vlgmr.msra.gmra.mrb[44].mxu0 %vm143_vm1, %v2812_v39  ;;  %6122 = vmatpush3.bf16.msra.mxu1 %v6121_v32 }
 0x22f   :  { %v6276_v51 = vpop.eup %6275  ;;  %v2813_v4 = vmul.f32 %v6274_v26, %v6990_v35  ;;  %6125 = vmatpush3.bf16.msra.mxu0 %v6124_v29  ;;  %v2731_v10 = vpop.xlane.xlu1 %2730  ;;  %5856 = vmatprep.mubr.msk.f32.mxu1 %vm6336_vm0, %v6337_v5  ;;  %v2868_v35 = vld [vmem:[%s7463_s2 + $0x120] sm:$0xff]  ;;  %v2878_v29 = vld [vmem:[%s7463_s2 + $0x170] sm:$0xff] }
 0x230   :  { %v2814_v44 = vmul.f32 %v6276_v51, %v6999_v36  ;;  %6285 = vrcp.f32 %v2731_v10  ;;  %v2734_v52 = vpop.xlane.xlu0 %2733  ;;  %5863 = vmatprep.mubr.msk.f32.mxu0 %vm6336_vm0, %v6337_v5  ;;  %6126 = vmatprep.subr.bf16.mxu1 %v6335_v3  ;;  %v6136_v2 = vpack.c.bf16 %v2869_v55, %v2868_v35  ;;  %v6151_v20 = vpack.c.bf16 %v2879_v63, %v2878_v29  ;;  %v2883_v10 = vld [vmem:[%s7463_s2 + $0x198] sm:$0xff] }
 0x231   :  { %6287 = vrcp.f32 %v2734_v52  ;;  %5857 = vmatmul.mubr.msk.f32.vlgmr.msra.gmra.mrb[44].mxu1 %vm143_vm1, %v2813_v4  ;;  %6129 = vmatprep.subr.bf16.mxu0 %v6335_v3  ;;  %v2882_v4 = vld [vmem:[%s7463_s2 + $0x190] sm:$0xff] }
 0x232   :  { %v6278_v36 = vpop.eup %6277  ;;  %5864 = vmatmul.mubr.msk.f32.vlgmr.msra.gmra.mrb[46].mxu0 %vm143_vm1, %v2814_v44  ;;  %6128 = vmatpush3.bf16.msra.mxu1 %v6127_v48  ;;  %v6157_v44 = vpack.c.bf16 %v2883_v10, %v2882_v4 }
 0x233   :  { %v6280_v0 = vpop.eup %6279  ;;  %v2815_v14 = vmul.f32 %v6278_v36, %v7007_v41  ;;  %6131 = vmatpush3.bf16.msra.mxu0 %v6130_v37  ;;  %v2737_v19 = vpop.xlane.xlu1 %2736  ;;  %5870 = vmatprep.mubr.msk.f32.mxu1 %vm6336_vm0, %v6337_v5  ;;  %v2872_v41 = vld [vmem:[%s7463_s2 + $0x140] sm:$0xff] }
 0x234   :  { %v2816_v47 = vmul.f32 %v6280_v0, %v7010_v15  ;;  %6289 = vrcp.f32 %v2737_v19  ;;  %v2740_v60 = vpop.xlane.xlu0 %2739  ;;  %5877 = vmatprep.mubr.msk.f32.mxu0 %vm6336_vm0, %v6337_v5  ;;  %6132 = vmatprep.subr.bf16.mxu1 %v6335_v3  ;;  %v6142_v13 = vpack.c.bf16 %v2873_v53, %v2872_v41  ;;  %v2887_v0 = vld [vmem:[%s7463_s2 + $0x1b8] sm:$0xff]  ;;  %v2890_v53 = vld [vmem:[%s7463_s2 + $0x1d0] sm:$0xff] }
 0x235   :  { %6291 = vrcp.f32 %v2740_v60  ;;  %5871 = vmatmul.mubr.msk.f32.vlgmr.msra.gmra.mrb[46].mxu1 %vm143_vm1, %v2815_v14  ;;  %6135 = vmatprep.subr.bf16.mxu0 %v6335_v3 }
 0x236   :  { %v6282_v15 = vpop.eup %6281  ;;  %5878 = vmatmul.mubr.msk.f32.vlgmr.msra.gmra.mrb[48].mxu0 %vm143_vm1, %v2816_v47  ;;  %6134 = vmatpush3.bf16.msra.mxu1 %v6133_v61  ;;  %v2886_v61 = vld [vmem:[%s7463_s2 + $0x1b0] sm:$0xff] }
 0x237   :  { %v6284_v16 = vpop.eup %6283  ;;  %v2817_v22 = vmul.f32 %v6282_v15, %v7018_v56  ;;  %6137 = vmatpush3.bf16.msra.mxu0 %v6136_v2  ;;  %v2743_v49 = vpop.xlane.xlu1 %2742  ;;  %5884 = vmatprep.mubr.msk.f32.mxu1 %vm6336_vm0, %v6337_v5  ;;  %v2876_v56 = vld [vmem:[%s7463_s2 + $0x160] sm:$0xff]  ;;  %v2889_v2 = vld [vmem:[%s7463_s2 + $0x1c8] sm:$0xff]  ;;  %v6163_v45 = vpack.c.bf16 %v2887_v0, %v2886_v61  ;;  %v2891_v15 = vld [vmem:[%s7463_s2 + $0x1d8] sm:$0xff] }
 0x238   :  { %v2818_v30 = vmul.f32 %v6284_v16, %v7020_v21  ;;  %6293 = vrcp.f32 %v2743_v49  ;;  %v2746_v7 = vpop.xlane.xlu0 %2745  ;;  %5891 = vmatprep.mubr.msk.f32.mxu0 %vm6336_vm0, %v6337_v5  ;;  %6138 = vmatprep.subr.bf16.mxu1 %v6335_v3  ;;  %v6148_v58 = vpack.c.bf16 %v2877_v31, %v2876_v56  ;;  %v2893_v16 = vld [vmem:[%s7463_s2 + $0x1e8] sm:$0xff] }
 0x239   :  { %6295 = vrcp.f32 %v2746_v7  ;;  %5885 = vmatmul.mubr.msk.f32.vlgmr.msra.gmra.mrb[48].mxu1 %vm143_vm1, %v2817_v22  ;;  %6141 = vmatprep.subr.bf16.mxu0 %v6335_v3 }
 0x23a   :  { %v6286_v21 = vpop.eup %6285  ;;  %5892 = vmatmul.mubr.msk.f32.vlgmr.msra.gmra.mrb[50].mxu0 %vm143_vm1, %v2818_v30  ;;  %6140 = vmatpush3.bf16.msra.mxu1 %v6139_v11  ;;  %v2895_v30 = vld [vmem:[%s7463_s2 + $0x1f8] sm:$0xff] }
 0x23b   :  { %v6288_v32 = vpop.eup %6287  ;;  %v2819_v34 = vmul.f32 %v6286_v21, %v7028_v62  ;;  %6143 = vmatpush3.bf16.msra.mxu0 %v6142_v13  ;;  %v2749_v25 = vpop.xlane.xlu1 %2748  ;;  %5898 = vmatprep.mubr.msk.f32.mxu1 %vm6336_vm0, %v6337_v5  ;;  %v2880_v62 = vld [vmem:[%s7463_s2 + $0x180] sm:$0xff]  ;;  %v6175_v56 = vpack.c.bf16 %v2895_v30, %v2894_v27 }
 0x23c   :  { %v2820_v1 = vmul.f32 %v6288_v32, %v7030_v28  ;;  %6297 = vrcp.f32 %v2749_v25  ;;  %v2752_v39 = vpop.xlane.xlu0 %2751  ;;  %5905 = vmatprep.mubr.msk.f32.mxu0 %vm6336_vm0, %v6337_v5  ;;  %6144 = vmatprep.subr.bf16.mxu1 %v6335_v3  ;;  %v6154_v51 = vpack.c.bf16 %v2881_v42, %v2880_v62 }
 0x23d   :  { %6299 = vrcp.f32 %v2752_v39  ;;  %5899 = vmatmul.mubr.msk.f32.vlgmr.msra.gmra.mrb[50].mxu1 %vm143_vm1, %v2819_v34  ;;  %6147 = vmatprep.subr.bf16.mxu0 %v6335_v3 }
 0x23e   :  { %v6290_v28 = vpop.eup %6289  ;;  %5906 = vmatmul.mubr.msk.f32.vlgmr.msra.gmra.mrb[52].mxu0 %vm143_vm1, %v2820_v1  ;;  %6146 = vmatpush3.bf16.msra.mxu1 %v6145_v8 }
 0x23f   :  { %v6292_v33 = vpop.eup %6291  ;;  %v2821_v26 = vmul.f32 %v6290_v28, %v7038_v6  ;;  %6149 = vmatpush3.bf16.msra.mxu0 %v6148_v58  ;;  %v2755_v48 = vpop.xlane.xlu1 %2754  ;;  %5912 = vmatprep.mubr.msk.f32.mxu1 %vm6336_vm0, %v6337_v5  ;;  %v2884_v6 = vld [vmem:[%s7463_s2 + $0x1a0] sm:$0xff] }
 0x240   :  { %v2822_v37 = vmul.f32 %v6292_v33, %v7040_v46  ;;  %6301 = vrcp.f32 %v2755_v48  ;;  %v2758_v9 = vpop.xlane.xlu0 %2757  ;;  %5919 = vmatprep.mubr.msk.f32.mxu0 %vm6336_vm0, %v6337_v5  ;;  %6150 = vmatprep.subr.bf16.mxu1 %v6335_v3  ;;  %v6160_v36 = vpack.c.bf16 %v2885_v43, %v2884_v6 }
 0x241   :  { %6303 = vrcp.f32 %v2758_v9  ;;  %5913 = vmatmul.mubr.msk.f32.vlgmr.msra.gmra.mrb[52].mxu1 %vm143_vm1, %v2821_v26  ;;  %6153 = vmatprep.subr.bf16.mxu0 %v6335_v3 }
 0x242   :  { %v6294_v46 = vpop.eup %6293  ;;  %5920 = vmatmul.mubr.msk.f32.vlgmr.msra.gmra.mrb[54].mxu0 %vm143_vm1, %v2822_v37  ;;  %6152 = vmatpush3.bf16.msra.mxu1 %v6151_v20 }
 0x243   :  { %v6296_v52 = vpop.eup %6295  ;;  %v2823_v35 = vmul.f32 %v6294_v46, %v7048_v12  ;;  %6155 = vmatpush3.bf16.msra.mxu0 %v6154_v51  ;;  %v2761_v55 = vpop.xlane.xlu1 %2760  ;;  %5926 = vmatprep.mubr.msk.f32.mxu1 %vm6336_vm0, %v6337_v5  ;;  %v2888_v12 = vld [vmem:[%s7463_s2 + $0x1c0] sm:$0xff] }
 0x244   :  { %v2824_v14 = vmul.f32 %v6296_v52, %v7050_v57  ;;  %6305 = vrcp.f32 %v2761_v55  ;;  %v2764_v19 = vpop.xlane.xlu0 %2763  ;;  %5933 = vmatprep.mubr.msk.f32.mxu0 %vm6336_vm0, %v6337_v5  ;;  %6156 = vmatprep.subr.bf16.mxu1 %v6335_v3  ;;  %v6166_v41 = vpack.c.bf16 %v2889_v2, %v2888_v12 }
 0x245   :  { %6307 = vrcp.f32 %v2764_v19  ;;  %5927 = vmatmul.mubr.msk.f32.vlgmr.msra.gmra.mrb[54].mxu1 %vm143_vm1, %v2823_v35  ;;  %6159 = vmatprep.subr.bf16.mxu0 %v6335_v3 }
 0x246   :  { %v6298_v57 = vpop.eup %6297  ;;  %5934 = vmatmul.mubr.msk.f32.vlgmr.msra.gmra.mrb[56].mxu0 %vm143_vm1, %v2824_v14  ;;  %6158 = vmatpush3.bf16.msra.mxu1 %v6157_v44 }
 0x247   :  { %v6300_v38 = vpop.eup %6299  ;;  %v2825_v47 = vmul.f32 %v6298_v57, %v7057_v18  ;;  %6161 = vmatpush3.bf16.msra.mxu0 %v6160_v36  ;;  %v2767_v60 = vpop.xlane.xlu1 %2766  ;;  %5940 = vmatprep.mubr.msk.f32.mxu1 %vm6336_vm0, %v6337_v5  ;;  %v2892_v18 = vld [vmem:[%s7463_s2 + $0x1e0] sm:$0xff]  ;;  %s6338_s2 = smov [#allocation2]  }
 0x248   :  { %v2826_v11 = vmul.f32 %v6300_v38, %v7059_v40  ;;  %6309 = vrcp.f32 %v2767_v60  ;;  %5947 = vmatprep.mubr.msk.f32.mxu0 %vm6336_vm0, %v6337_v5  ;;  %6162 = vmatprep.subr.bf16.mxu1 %v6335_v3  ;;  %v6169_v40 = vpack.c.bf16 %v2891_v15, %v2890_v53  ;;  %v6172_v59 = vpack.c.bf16 %v2893_v16, %v2892_v18  ;;  %s5270_s25 = sshll.u32 %s6338_s2, 4  ;;  %s5271_s25 = int_to_ptr.vmem [resolvable:$true] %s5270_s25 }
 0x249   :  { %5941 = vmatmul.mubr.msk.f32.vlgmr.msra.gmra.mrb[56].mxu1 %vm143_vm1, %v2825_v47  ;;  %6165 = vmatprep.subr.bf16.mxu0 %v6335_v3  ;;  %s6311_s26 = scalar_lea.vmem %s5271_s25, 4096  ;;  %p6316_p1 = scmp.lt.s32.totalorder %s5271_s25, %s5271_s25 }
 0x24a   :  { %v6302_v22 = vpop.eup %6301  ;;  %5948 = vmatmul.mubr.msk.f32.vlgmr.msra.gmra.mrb[58].mxu0 %vm143_vm1, %v2826_v11  ;;  %6164 = vmatpush3.bf16.msra.mxu1 %v6163_v45  ;;  %p6312_p0 = scmp.ne.s32.totalorder %s5271_s25, %s6311_s26  ;;  %p6317_p2 = scmp.lt.s32.totalorder %s6311_s26, %s6311_s26 }
 0x24b   :  { %v6304_v49 = vpop.eup %6303  ;;  %v2827_v13 = vmul.f32 %v6302_v22, %v7065_v23  ;;  %6167 = vmatpush3.bf16.msra.mxu0 %v6166_v41  ;;  %5954 = vmatprep.mubr.msk.f32.mxu1 %vm6336_vm0, %v6337_v5 }
 0x24c   :  { %v2828_v7 = vmul.f32 %v6304_v49, %v7067_v50  ;;  %5961 = vmatprep.mubr.msk.f32.mxu0 %vm6336_vm0, %v6337_v5  ;;  %6168 = vmatprep.subr.bf16.mxu1 %v6335_v3  ;;  %p6318_p3 = por %p6317_p2, %p6316_p1 }
 0x24d   :  { %5955 = vmatmul.mubr.msk.f32.vlgmr.msra.gmra.mrb[58].mxu1 %vm143_vm1, %v2827_v13  ;;  %6171 = vmatprep.subr.bf16.mxu0 %v6335_v3 }
 0x24e   :  { %v6306_v23 = vpop.eup %6305  ;;  %5962 = vmatmul.mubr.msk.f32.vlgmr.msra.gmra.mrb[60].mxu0 %vm143_vm1, %v2828_v7  ;;  %6170 = vmatpush3.bf16.msra.mxu1 %v6169_v40  ;;  %p6319_p4 = pnand %p6318_p3, %p6312_p0 }
 0x24f   :  { %v6308_v31 = vpop.eup %6307  ;;  %v2829_v21 = vmul.f32 %v6306_v23, %v7073_v24  ;;  %6173 = vmatpush3.bf16.msra.mxu0 %v6172_v59  ;;  %5968 = vmatprep.mubr.msk.f32.mxu1 %vm6336_vm0, %v6337_v5 }
 0x250   :  { %v2830_v50 = vmul.f32 %v6308_v31, %v7075_v17  ;;  %5975 = vmatprep.mubr.msk.f32.mxu0 %vm6336_vm0, %v6337_v5  ;;  %6174 = vmatprep.subr.bf16.mxu1 %v6335_v3 }
 0x251   :  { %5969 = vmatmul.mubr.msk.f32.vlgmr.msra.gmra.mrb[60].mxu1 %vm143_vm1, %v2829_v21 }
 0x252   :  { %v6310_v8 = vpop.eup %6309  ;;  %5976 = vmatmul.mubr.msk.f32.vlgmr.msra.gmra.mrb[62].mxu0 %vm143_vm1, %v2830_v50  ;;  %6176 = vmatpush3.bf16.msra.mxu1 %v6175_v56 }
 0x253   :  { %v2831_v32 = vmul.f32 %v6310_v8, %v7081_v54  ;;  %5982 = vmatprep.mubr.msk.f32.mxu1 %vm6336_vm0, %v6337_v5 }
 0x255   :  { %5983 = vmatmul.mubr.msk.f32.vlgmr.msra.gmra.mrb[62].mxu1 %vm143_vm1, %v2831_v32 }
 0x2e8   :  { %v2965_v24 = vpop.f32.mrb[32].mxu0 }
 0x2e9   :  { %5233 = vst.msk [vmem:[#allocation2] sm:$0xff] %vm5232_vm2, %v2965_v24  ;;  %v5767_v17 = vpop.f32.mrb[33].mxu0 }
 0x2ec   :  { %v3038_v34 = vpop.f32.mrb[32].mxu1 }
 0x2ed   :  { %5234 = vst.msk [vmem:[#allocation2 + $0x8] sm:$0xff] %vm5232_vm2, %v3038_v34  ;;  %v3111_v3 = vpop.f32.mrb[34].mxu0  ;;  %v5774_v25 = vpop.f32.mrb[33].mxu1 }
 0x2ee   :  { %5235 = vst.msk [vmem:[#allocation2 + $0x10] sm:$0xff] %vm5232_vm2, %v3111_v3  ;;  %v5781_v58 = vpop.f32.mrb[35].mxu0 }
 0x2f0   :  { %v3184_v29 = vpop.f32.mrb[34].mxu1 }
 0x2f1   :  { %5236 = vst.msk [vmem:[#allocation2 + $0x18] sm:$0xff] %vm5232_vm2, %v3184_v29  ;;  %v3257_v54 = vpop.f32.mrb[36].mxu0  ;;  %v5788_v5 = vpop.f32.mrb[35].mxu1 }
 0x2f2   :  { %5237 = vst.msk [vmem:[#allocation2 + $0x20] sm:$0xff] %vm5232_vm2, %v3257_v54  ;;  %v5795_v63 = vpop.f32.mrb[37].mxu0 }
 0x2f4   :  { %v3330_v1 = vpop.f32.mrb[36].mxu1 }
 0x2f5   :  { %5238 = vst.msk [vmem:[#allocation2 + $0x28] sm:$0xff] %vm5232_vm2, %v3330_v1  ;;  %v3403_v39 = vpop.f32.mrb[38].mxu0  ;;  %v5802_v62 = vpop.f32.mrb[37].mxu1 }
 0x2f6   :  { %5239 = vst.msk [vmem:[#allocation2 + $0x30] sm:$0xff] %vm5232_vm2, %v3403_v39  ;;  %v5809_v42 = vpop.f32.mrb[39].mxu0 }
 0x2f8   :  { %v3476_v28 = vpop.f32.mrb[38].mxu1 }
 0x2f9   :  { %5240 = vst.msk [vmem:[#allocation2 + $0x38] sm:$0xff] %vm5232_vm2, %v3476_v28  ;;  %v3549_v20 = vpop.f32.mrb[40].mxu0  ;;  %v5816_v33 = vpop.f32.mrb[39].mxu1 }
 0x2fa   :  { %5241 = vst.msk [vmem:[#allocation2 + $0x40] sm:$0xff] %vm5232_vm2, %v3549_v20  ;;  %v5823_v26 = vpop.f32.mrb[41].mxu0 }
 0x2fc   :  { %v3622_v48 = vpop.f32.mrb[40].mxu1 }
 0x2fd   :  { %5242 = vst.msk [vmem:[#allocation2 + $0x48] sm:$0xff] %vm5232_vm2, %v3622_v48  ;;  %v3695_v51 = vpop.f32.mrb[42].mxu0  ;;  %v5830_v4 = vpop.f32.mrb[41].mxu1 }
 0x2fe   :  { %5243 = vst.msk [vmem:[#allocation2 + $0x50] sm:$0xff] %vm5232_vm2, %v3695_v51  ;;  %v5837_v10 = vpop.f32.mrb[43].mxu0 }
 0x300   :  { %v3768_v37 = vpop.f32.mrb[42].mxu1 }
 0x301   :  { %5244 = vst.msk [vmem:[#allocation2 + $0x58] sm:$0xff] %vm5232_vm2, %v3768_v37  ;;  %v3841_v9 = vpop.f32.mrb[44].mxu0  ;;  %v5844_v6 = vpop.f32.mrb[43].mxu1 }
 0x302   :  { %5245 = vst.msk [vmem:[#allocation2 + $0x60] sm:$0xff] %vm5232_vm2, %v3841_v9  ;;  %v5851_v43 = vpop.f32.mrb[45].mxu0 }
 0x304   :  { %v3914_v46 = vpop.f32.mrb[44].mxu1 }
 0x305   :  { %5246 = vst.msk [vmem:[#allocation2 + $0x68] sm:$0xff] %vm5232_vm2, %v3914_v46  ;;  %v3987_v44 = vpop.f32.mrb[46].mxu0  ;;  %v5858_v52 = vpop.f32.mrb[45].mxu1 }
 0x306   :  { %5247 = vst.msk [vmem:[#allocation2 + $0x70] sm:$0xff] %vm5232_vm2, %v3987_v44  ;;  %v5865_v35 = vpop.f32.mrb[47].mxu0 }
 0x308   :  { %v4060_v55 = vpop.f32.mrb[46].mxu1 }
 0x309   :  { %5248 = vst.msk [vmem:[#allocation2 + $0x78] sm:$0xff] %vm5232_vm2, %v4060_v55  ;;  %v4133_v36 = vpop.f32.mrb[48].mxu0  ;;  %v5872_v61 = vpop.f32.mrb[47].mxu1 }
 0x30a   :  { %5249 = vst.msk [vmem:[#allocation2 + $0x80] sm:$0xff] %vm5232_vm2, %v4133_v36  ;;  %v5879_v0 = vpop.f32.mrb[49].mxu0 }
 0x30c   :  { %v4206_v14 = vpop.f32.mrb[48].mxu1 }
 0x30d   :  { %5250 = vst.msk [vmem:[#allocation2 + $0x88] sm:$0xff] %vm5232_vm2, %v4206_v14  ;;  %v4279_v19 = vpop.f32.mrb[50].mxu0  ;;  %v5886_v12 = vpop.f32.mrb[49].mxu1 }
 0x30e   :  { %5251 = vst.msk [vmem:[#allocation2 + $0x90] sm:$0xff] %vm5232_vm2, %v4279_v19  ;;  %v5893_v2 = vpop.f32.mrb[51].mxu0 }
 0x310   :  { %v4352_v57 = vpop.f32.mrb[50].mxu1 }
 0x311   :  { %5252 = vst.msk [vmem:[#allocation2 + $0x98] sm:$0xff] %vm5232_vm2, %v4352_v57  ;;  %v4425_v45 = vpop.f32.mrb[52].mxu0  ;;  %v5900_v38 = vpop.f32.mrb[51].mxu1 }
 0x312   :  { %5253 = vst.msk [vmem:[#allocation2 + $0xa0] sm:$0xff] %vm5232_vm2, %v4425_v45  ;;  %v5907_v47 = vpop.f32.mrb[53].mxu0 }
 0x314   :  { %v4498_v60 = vpop.f32.mrb[52].mxu1 }
 0x315   :  { %5254 = vst.msk [vmem:[#allocation2 + $0xa8] sm:$0xff] %vm5232_vm2, %v4498_v60  ;;  %v4571_v41 = vpop.f32.mrb[54].mxu0  ;;  %v5914_v53 = vpop.f32.mrb[53].mxu1 }
 0x316   :  { %5255 = vst.msk [vmem:[#allocation2 + $0xb0] sm:$0xff] %vm5232_vm2, %v4571_v41  ;;  %v5921_v15 = vpop.f32.mrb[55].mxu0 }
 0x318   :  { %v4644_v11 = vpop.f32.mrb[54].mxu1 }
 0x319   :  { %5256 = vst.msk [vmem:[#allocation2 + $0xb8] sm:$0xff] %vm5232_vm2, %v4644_v11  ;;  %v4717_v18 = vpop.f32.mrb[56].mxu0  ;;  %v5928_v16 = vpop.f32.mrb[55].mxu1 }
 0x31a   :  { %5257 = vst.msk [vmem:[#allocation2 + $0xc0] sm:$0xff] %vm5232_vm2, %v4717_v18  ;;  %v5935_v22 = vpop.f32.mrb[57].mxu0 }
 0x31c   :  { %v4790_v40 = vpop.f32.mrb[56].mxu1 }
 0x31d   :  { %5258 = vst.msk [vmem:[#allocation2 + $0xc8] sm:$0xff] %vm5232_vm2, %v4790_v40  ;;  %v4863_v49 = vpop.f32.mrb[58].mxu0  ;;  %v5942_v13 = vpop.f32.mrb[57].mxu1 }
 0x31e   :  { %5259 = vst.msk [vmem:[#allocation2 + $0xd0] sm:$0xff] %vm5232_vm2, %v4863_v49  ;;  %v5949_v59 = vpop.f32.mrb[59].mxu0 }
 0x320   :  { %v4936_v27 = vpop.f32.mrb[58].mxu1 }
 0x321   :  { %5260 = vst.msk [vmem:[#allocation2 + $0xd8] sm:$0xff] %vm5232_vm2, %v4936_v27  ;;  %v5009_v30 = vpop.f32.mrb[60].mxu0  ;;  %v5956_v7 = vpop.f32.mrb[59].mxu1 }
 0x322   :  { %5261 = vst.msk [vmem:[#allocation2 + $0xe0] sm:$0xff] %vm5232_vm2, %v5009_v30  ;;  %v5963_v23 = vpop.f32.mrb[61].mxu0 }
 0x324   :  { %v5082_v56 = vpop.f32.mrb[60].mxu1 }
 0x325   :  { %5262 = vst.msk [vmem:[#allocation2 + $0xe8] sm:$0xff] %vm5232_vm2, %v5082_v56  ;;  %v5155_v31 = vpop.f32.mrb[62].mxu0  ;;  %v5970_v21 = vpop.f32.mrb[61].mxu1 }
 0x326   :  { %5263 = vst.msk [vmem:[#allocation2 + $0xf0] sm:$0xff] %vm5232_vm2, %v5155_v31  ;;  %v5977_v50 = vpop.f32.mrb[63].mxu0 }
 0x328   :  { %v5228_v8 = vpop.f32.mrb[62].mxu1 }
 0x329   :  { %5264 = vst.msk [vmem:[#allocation2 + $0xf8] sm:$0xff] %vm5232_vm2, %v5228_v8  ;;  %v5984_v32 = vpop.f32.mrb[63].mxu1 }
 0x32a   :  { %6322 = shalt.err (!%p6319_p4)
}
 0x32b   :  { %s6323_s29 = scalar_lea.hbm %s7464_s3, 4096 }
 0x32c   :  { %p6324_p5 = scmp.ne.s32.totalorder %s7464_s3, %s6323_s29  ;;  %p6327_p6 = scmp.lt.u32.totalorder %s6323_s29, %s7464_s3 }
 0x32e   :  { %p6329_p7 = pnand %p6327_p6, %p6324_p5 }
 0x330   :  { %6332 = shalt.err (!%p6329_p7)
}
 0x331   :  { %s6339_s7 = smov 128   ;;  %s6340_s8 = smov 8  }
 0x332   :  { %5276 = dma.vmem_to_hbm [thread:$0]  %s5271_s25, 4096, %s7464_s3, [#allocation3], %s6339_s7, %s6339_s7, %s6340_s8  }
 0x333   :  { %6333 = dma.done.wait [#allocation3], 4096  }
 0x334   :  { %6334 = vsyncadd [#allocation3], 4294963200 }
 0x335   :  { %5280 = vsyncpa [#allocation3], 1 }

</bundles_post_ra>
